<compile_context>
chip_gen: v6e
topology: v6e:2x2x1
jax: 0.10.0
libtpu: 0.0.40
codegen_flags: <defaults>
</compile_context>

<pallas_src>
import functools

import jax
import jax.numpy as jnp
from jax.experimental import pallas as pl
from jax.experimental.pallas import tpu as pltpu


LEAKY_SLOPE = 0.2
BN_EPS = 1e-5


def _bn_leaky(h, gamma, beta):
    """Training-mode BatchNorm1d (one-pass batch stats, biased var) + LeakyReLU(0.2)."""
    inv_b = 1.0 / h.shape[0]
    s = jnp.sum(h, axis=0, keepdims=True)
    ss = jnp.sum(h * h, axis=0, keepdims=True)
    mean = s * inv_b
    var = jnp.maximum(ss * inv_b - mean * mean, 0.0)  # biased, like torch train-mode
    h = (h - mean) * jax.lax.rsqrt(var + BN_EPS)
    h = h * gamma + beta
    return jnp.where(h > 0, h, LEAKY_SLOPE * h)


def decoder_kernel(
    x_ref,
    w1_ref, g1_ref, be1_ref,
    w2_ref, g2_ref, be2_ref,
    w3_ref, g3_ref, be3_ref,
    w4_ref, b4_ref,
    o_ref,
    h3_ref,           # persistent VMEM scratch, (B, FH) bf16
):
    # Hidden stack: computed once per outer grid chunk (once per TensorCore on v7x),
    # kept resident in VMEM scratch for all column tiles of that chunk.
    @pl.when(pl.program_id(1) == 0)
    def _():
        # Pre-BN Linear biases omitted: cancelled exactly by the BN mean subtraction.
        x = x_ref[...].astype(jnp.bfloat16)
        h = jnp.dot(x, w1_ref[...], preferred_element_type=jnp.float32)
        h = _bn_leaky(h, g1_ref[...], be1_ref[...])
        h = jnp.dot(h.astype(jnp.bfloat16), w2_ref[...], preferred_element_type=jnp.float32)
        h = _bn_leaky(h, g2_ref[...], be2_ref[...])
        h = jnp.dot(h.astype(jnp.bfloat16), w3_ref[...], preferred_element_type=jnp.float32)
        h = _bn_leaky(h, g3_ref[...], be3_ref[...])
        h3_ref[...] = h.astype(jnp.bfloat16)

    # Final Linear -> Tanh on the current output-column tile (w4 streamed, DMA-bound).
    acc = jnp.dot(h3_ref[...], w4_ref[...], preferred_element_type=jnp.float32)
    o_ref[...] = jnp.tanh(acc + b4_ref[...])


def _pick_tile(out_dim, first_hidden, batch):
    """Largest lane-dense column tile whose streamed buffers fit the VMEM budget."""
    padded = pl.cdiv(out_dim, 128) * 128
    budget = 20 * 1024 * 1024  # headroom under the 32 MiB limit we request (v5e-safe)
    for tn in (4096, 2048, 1024, 512, 256, 128):
        if tn > padded:
            continue
        # double-buffered streaming tiles: w4 (bf16), b4 (f32), out (f32)
        need = 2 * (first_hidden * tn * 2 + tn * 4 + batch * tn * 4)
        if need <= budget:
            return tn
    return 128


def init_params(key, latent_dim, img_dim, first_hidden_dim):
    """Init mimicking torch.nn.Linear (U[-1/sqrt(fan_in), +1/sqrt(fan_in)]).

    Weights stored in bf16 (MXU-native); b4 / BN affine params stay f32.
    b1/b2/b3 are not materialized: they are dead parameters under training-mode BN.
    """
    c, hgt, wdt = img_dim
    out_dim = c * hgt * wdt
    dims = [
        (latent_dim, first_hidden_dim // 4),
        (first_hidden_dim // 4, first_hidden_dim // 2),
        (first_hidden_dim // 2, first_hidden_dim),
        (first_hidden_dim, out_dim),
    ]
    keys = jax.random.split(key, 2 * len(dims))
    ws = []
    for i, (fin, fout) in enumerate(dims):
        bound = 1.0 / float(fin) ** 0.5
        w = jax.random.uniform(keys[2 * i], (fin, fout), jnp.float32, -bound, bound)
        ws.append(w.astype(jnp.bfloat16))
    bound4 = 1.0 / float(dims[3][0]) ** 0.5
    b4 = jax.random.uniform(keys[-1], (1, out_dim), jnp.float32, -bound4, bound4)

    # BatchNorm affine params (gamma=1, beta=0) for the first three blocks.
    bns = [
        (jnp.ones((1, d[1]), jnp.float32), jnp.zeros((1, d[1]), jnp.float32))
        for d in dims[:3]
    ]
    params = (ws[0], ws[1], ws[2], ws[3], b4)
    return params, bns


@functools.partial(jax.jit, static_argnames=("img_dim",))
def basic_decoder(x, params, bns, img_dim):
    b, latent = x.shape
    if b < 2:
        # PyTorch raises for batch=1 in train-mode BatchNorm; enforce the same.
        raise ValueError("Training-mode BatchNorm1d requires batch size >= 2.")
    c, hgt, wdt = img_dim
    out_dim = c * hgt * wdt

    w1, w2, w3, w4, b4 = params
    (g1, be1), (g2, be2), (g3, be3) = bns
    h1, h2, fh = w1.shape[1], w2.shape[1], w3.shape[1]

    tn = _pick_tile(out_dim, fh, b)
    num_tiles = pl.cdiv(out_dim, tn)
    # Leading "parallel" axis of 2 when it divides evenly -> v7x 2-TC split of the
    # w4 stream; each core initializes its own h3 scratch at inner index 0.
    n_outer = 2 if (num_tiles >= 2 and num_tiles % 2 == 0) else 1
    n_inner = num_tiles // n_outer

    col = lambda i, j: (0, i * n_inner + j)    # streamed column tiles
    const = lambda i, j: (0, 0)                # resident (fetched once)

    out_flat = pl.pallas_call(
        decoder_kernel,
        out_shape=jax.ShapeDtypeStruct((b, out_dim), jnp.float32),
        grid_spec=pltpu.PrefetchScalarGridSpec(
            num_scalar_prefetch=0,
            grid=(n_outer, n_inner),
            in_specs=[
                pl.BlockSpec((b, latent), const),
                pl.BlockSpec((latent, h1), const),
                pl.BlockSpec((1, h1), const),
                pl.BlockSpec((1, h1), const),
                pl.BlockSpec((h1, h2), const),
                pl.BlockSpec((1, h2), const),
                pl.BlockSpec((1, h2), const),
                pl.BlockSpec((h2, fh), const),
                pl.BlockSpec((1, fh), const),
                pl.BlockSpec((1, fh), const),
                pl.BlockSpec((fh, tn), col),   # w4: streamed, double-buffered
                pl.BlockSpec((1, tn), col),    # b4: streamed (tiny)
            ],
            out_specs=pl.BlockSpec((b, tn), col),
            scratch_shapes=[pltpu.VMEM((b, fh), jnp.bfloat16)],
        ),
        compiler_params=pltpu.CompilerParams(
            dimension_semantics=("parallel", "arbitrary"),
            vmem_limit_bytes=32 * 1024 * 1024,
        ),
        cost_estimate=pl.CostEstimate(
            flops=2 * b * (latent * h1 + h1 * h2 + h2 * fh + fh * out_dim),
            transcendentals=b * out_dim + 3 * b * fh,
            bytes_accessed=(x.size * 4 + w1.size * 2 + w2.size * 2 + w3.size * 2
                            + w4.size * 2 + b4.size * 4 + b * out_dim * 4),
        ),
    )(x, w1, g1, be1, w2, g2, be2, w3, g3, be3, w4, b4)

    # nn.Unflatten(1, img_dim): (B, C*H*W) -> (B, C, H, W)
    return out_flat.reshape(b, c, hgt, wdt)


def reference_decoder(x, params, bns, img_dim):
    """Pure-JAX f32 reference of the same forward (train-mode BN, biases cancelled)."""
    w1, w2, w3, w4, b4 = params
    (g1, be1), (g2, be2), (g3, be3) = bns

    def bn_lrelu(h, g, be):
        m = h.mean(axis=0, keepdims=True)
        v = ((h - m) ** 2).mean(axis=0, keepdims=True)
        h = (h - m) / jnp.sqrt(v + BN_EPS) * g + be
        return jnp.where(h > 0, h, LEAKY_SLOPE * h)

    h = bn_lrelu(x @ w1.astype(jnp.float32), g1, be1)
    h = bn_lrelu(h @ w2.astype(jnp.float32), g2, be2)
    h = bn_lrelu(h @ w3.astype(jnp.float32), g3, be3)
    y = jnp.tanh(h @ w4.astype(jnp.float32) + b4)
    return y.reshape((x.shape[0],) + tuple(img_dim))


if __name__ == "__main__":
    # Small MNIST-like decoder shapes: out_dim = 784 (not a multiple of 128) exercises
    # the cdiv/ragged-tile path and the 2-way outer grid split.
    BATCH = 32
    LATENT_DIM = 32
    IMG_DIM = (1, 28, 28)       # out_dim = 784
    FIRST_HIDDEN = 256          # torch default; hidden widths 64 -> 128 -> 256

    key = jax.random.PRNGKey(0)
    k_x, k_p = jax.random.split(key)
    x = jax.random.normal(k_x, (BATCH, LATENT_DIM), jnp.float32)
    params, bns = init_params(k_p, LATENT_DIM, IMG_DIM, FIRST_HIDDEN)

    out = basic_decoder(x, params, bns, IMG_DIM)
    jax.block_until_ready(out)

    assert out.shape == (BATCH,) + IMG_DIM, out.shape
    assert bool(jnp.all(jnp.isfinite(out)))
    assert bool(jnp.all(jnp.abs(out) <= 1.0 + 1e-6))  # tanh range

    ref = reference_decoder(x, params, bns, IMG_DIM)
    max_err = float(jnp.max(jnp.abs(out - ref)))
    assert max_err < 0.1, f"max abs diff vs f32 reference: {max_err}"

    print("KERNEL_OK")
</pallas_src>

<mosaic_0001>
module attributes {stable_mosaic.version = 11 : i64} {
  func.func @decoder_kernel(%arg0: i32, %arg1: i32, %arg2: memref<32x32xf32, #tpu.memory_space<vmem>>, %arg3: memref<32x64xbf16, #tpu.memory_space<vmem>>, %arg4: memref<1x64xf32, #tpu.memory_space<vmem>>, %arg5: memref<1x64xf32, #tpu.memory_space<vmem>>, %arg6: memref<64x128xbf16, #tpu.memory_space<vmem>>, %arg7: memref<1x128xf32, #tpu.memory_space<vmem>>, %arg8: memref<1x128xf32, #tpu.memory_space<vmem>>, %arg9: memref<128x256xbf16, #tpu.memory_space<vmem>>, %arg10: memref<1x256xf32, #tpu.memory_space<vmem>>, %arg11: memref<1x256xf32, #tpu.memory_space<vmem>>, %arg12: memref<256x512xbf16, #tpu.memory_space<vmem>>, %arg13: memref<1x512xf32, #tpu.memory_space<vmem>>, %arg14: memref<32x512xf32, #tpu.memory_space<vmem>>, %arg15: memref<32x256xbf16, #tpu.memory_space<vmem>>) attributes {dimension_semantics = [#tpu.dimension_semantics<parallel>, #tpu.dimension_semantics<arbitrary>], iteration_bounds = array<i64: 2, 1>, scalar_prefetch = 0 : i64, scratch_operands = 1 : i64, tpu.core_type = #tpu.core_type<tc>, window_params = [{pipeline_mode = #tpu.pipeline_mode<synchronous>, transform_indices = @transform_0, window_bounds = array<i64: 32, 32>}, {pipeline_mode = #tpu.pipeline_mode<synchronous>, transform_indices = @transform_1, window_bounds = array<i64: 32, 64>}, {pipeline_mode = #tpu.pipeline_mode<synchronous>, transform_indices = @transform_2, window_bounds = array<i64: 1, 64>}, {pipeline_mode = #tpu.pipeline_mode<synchronous>, transform_indices = @transform_3, window_bounds = array<i64: 1, 64>}, {pipeline_mode = #tpu.pipeline_mode<synchronous>, transform_indices = @transform_4, window_bounds = array<i64: 64, 128>}, {pipeline_mode = #tpu.pipeline_mode<synchronous>, transform_indices = @transform_5, window_bounds = array<i64: 1, 128>}, {pipeline_mode = #tpu.pipeline_mode<synchronous>, transform_indices = @transform_6, window_bounds = array<i64: 1, 128>}, {pipeline_mode = #tpu.pipeline_mode<synchronous>, transform_indices = @transform_7, window_bounds = array<i64: 128, 256>}, {pipeline_mode = #tpu.pipeline_mode<synchronous>, transform_indices = @transform_8, window_bounds = array<i64: 1, 256>}, {pipeline_mode = #tpu.pipeline_mode<synchronous>, transform_indices = @transform_9, window_bounds = array<i64: 1, 256>}, {transform_indices = @transform_10, window_bounds = array<i64: 256, 512>}, {transform_indices = @transform_11, window_bounds = array<i64: 1, 512>}, {transform_indices = @transform_12, window_bounds = array<i64: 32, 512>}]} {
    %c0_i32 = arith.constant 0 : i32
    %0 = arith.cmpi eq, %arg1, %c0_i32 : i32
    %1 = arith.extui %0 : i1 to i32
    %c0_i32_0 = arith.constant 0 : i32
    %2 = arith.cmpi ne, %1, %c0_i32_0 : i32
    scf.if %2 {
      %c0_8 = arith.constant 0 : index
      %c0_9 = arith.constant 0 : index
      %11 = vector.load %arg2[%c0_8, %c0_9] : memref<32x32xf32, #tpu.memory_space<vmem>>, vector<32x32xf32>
      %12 = arith.truncf %11 : vector<32x32xf32> to vector<32x32xbf16>
      %c0_10 = arith.constant 0 : index
      %c0_11 = arith.constant 0 : index
      %13 = vector.load %arg3[%c0_10, %c0_11] : memref<32x64xbf16, #tpu.memory_space<vmem>>, vector<32x64xbf16>
      %cst_12 = arith.constant dense<0.000000e+00> : vector<32x64xf32>
      %14 = tpu.matmul %12, %13, %cst_12 {dimension_numbers = #tpu.dot_dimension_numbers<[1], [0], [0], [1], [0, 0, 1, 1], [], []>} : vector<32x32xbf16>, vector<32x64xbf16>, vector<32x64xf32> -> vector<32x64xf32>
      %c0_13 = arith.constant 0 : index
      %c0_14 = arith.constant 0 : index
      %15 = vector.load %arg4[%c0_13, %c0_14] : memref<1x64xf32, #tpu.memory_space<vmem>>, vector<1x64xf32>
      %c0_15 = arith.constant 0 : index
      %c0_16 = arith.constant 0 : index
      %16 = vector.load %arg5[%c0_15, %c0_16] : memref<1x64xf32, #tpu.memory_space<vmem>>, vector<1x64xf32>
      %cst_17 = arith.constant dense<0.000000e+00> : vector<64xf32>
      %17 = vector.multi_reduction <add>, %14, %cst_17 [0] : vector<32x64xf32> to vector<64xf32>
      %18 = vector.shape_cast %17 : vector<64xf32> to vector<1x64xf32>
      %19 = arith.mulf %14, %14 : vector<32x64xf32>
      %cst_18 = arith.constant dense<0.000000e+00> : vector<64xf32>
      %20 = vector.multi_reduction <add>, %19, %cst_18 [0] : vector<32x64xf32> to vector<64xf32>
      %21 = vector.shape_cast %20 : vector<64xf32> to vector<1x64xf32>
      %cst_19 = arith.constant 3.125000e-02 : f32
      %22 = vector.broadcast %cst_19 : f32 to vector<1x64xf32>
      %23 = arith.mulf %18, %22 : vector<1x64xf32>
      %cst_20 = arith.constant 3.125000e-02 : f32
      %24 = vector.broadcast %cst_20 : f32 to vector<1x64xf32>
      %25 = arith.mulf %21, %24 : vector<1x64xf32>
      %26 = arith.mulf %23, %23 : vector<1x64xf32>
      %27 = arith.subf %25, %26 : vector<1x64xf32>
      %cst_21 = arith.constant 0.000000e+00 : f32
      %28 = vector.broadcast %cst_21 : f32 to vector<1x64xf32>
      %29 = arith.maximumf %27, %28 : vector<1x64xf32>
      %30 = vector.broadcast %23 : vector<1x64xf32> to vector<32x64xf32>
      %31 = arith.subf %14, %30 : vector<32x64xf32>
      %cst_22 = arith.constant 9.99999974E-6 : f32
      %32 = vector.broadcast %cst_22 : f32 to vector<1x64xf32>
      %33 = arith.addf %29, %32 : vector<1x64xf32>
      %34 = math.rsqrt %33 : vector<1x64xf32>
      %35 = vector.broadcast %34 : vector<1x64xf32> to vector<32x64xf32>
      %36 = arith.mulf %31, %35 : vector<32x64xf32>
      %37 = vector.broadcast %15 : vector<1x64xf32> to vector<32x64xf32>
      %38 = arith.mulf %36, %37 : vector<32x64xf32>
      %39 = vector.broadcast %16 : vector<1x64xf32> to vector<32x64xf32>
      %40 = arith.addf %38, %39 : vector<32x64xf32>
      %cst_23 = arith.constant 0.000000e+00 : f32
      %41 = vector.broadcast %cst_23 : f32 to vector<32x64xf32>
      %42 = arith.cmpf ogt, %40, %41 : vector<32x64xf32>
      %cst_24 = arith.constant 2.000000e-01 : f32
      %43 = vector.broadcast %cst_24 : f32 to vector<32x64xf32>
      %44 = arith.mulf %43, %40 : vector<32x64xf32>
      %45 = arith.select %42, %40, %44 : vector<32x64xi1>, vector<32x64xf32>
      %46 = arith.truncf %45 : vector<32x64xf32> to vector<32x64xbf16>
      %c0_25 = arith.constant 0 : index
      %c0_26 = arith.constant 0 : index
      %47 = vector.load %arg6[%c0_25, %c0_26] : memref<64x128xbf16, #tpu.memory_space<vmem>>, vector<64x128xbf16>
      %cst_27 = arith.constant dense<0.000000e+00> : vector<32x128xf32>
      %48 = tpu.matmul %46, %47, %cst_27 {dimension_numbers = #tpu.dot_dimension_numbers<[1], [0], [0], [1], [0, 0, 1, 1], [], []>} : vector<32x64xbf16>, vector<64x128xbf16>, vector<32x128xf32> -> vector<32x128xf32>
      %c0_28 = arith.constant 0 : index
      %c0_29 = arith.constant 0 : index
      %49 = vector.load %arg7[%c0_28, %c0_29] : memref<1x128xf32, #tpu.memory_space<vmem>>, vector<1x128xf32>
      %c0_30 = arith.constant 0 : index
      %c0_31 = arith.constant 0 : index
      %50 = vector.load %arg8[%c0_30, %c0_31] : memref<1x128xf32, #tpu.memory_space<vmem>>, vector<1x128xf32>
      %cst_32 = arith.constant dense<0.000000e+00> : vector<128xf32>
      %51 = vector.multi_reduction <add>, %48, %cst_32 [0] : vector<32x128xf32> to vector<128xf32>
      %52 = vector.shape_cast %51 : vector<128xf32> to vector<1x128xf32>
      %53 = arith.mulf %48, %48 : vector<32x128xf32>
      %cst_33 = arith.constant dense<0.000000e+00> : vector<128xf32>
      %54 = vector.multi_reduction <add>, %53, %cst_33 [0] : vector<32x128xf32> to vector<128xf32>
      %55 = vector.shape_cast %54 : vector<128xf32> to vector<1x128xf32>
      %cst_34 = arith.constant 3.125000e-02 : f32
      %56 = vector.broadcast %cst_34 : f32 to vector<1x128xf32>
      %57 = arith.mulf %52, %56 : vector<1x128xf32>
      %cst_35 = arith.constant 3.125000e-02 : f32
      %58 = vector.broadcast %cst_35 : f32 to vector<1x128xf32>
      %59 = arith.mulf %55, %58 : vector<1x128xf32>
      %60 = arith.mulf %57, %57 : vector<1x128xf32>
      %61 = arith.subf %59, %60 : vector<1x128xf32>
      %cst_36 = arith.constant 0.000000e+00 : f32
      %62 = vector.broadcast %cst_36 : f32 to vector<1x128xf32>
      %63 = arith.maximumf %61, %62 : vector<1x128xf32>
      %64 = vector.broadcast %57 : vector<1x128xf32> to vector<32x128xf32>
      %65 = arith.subf %48, %64 : vector<32x128xf32>
      %cst_37 = arith.constant 9.99999974E-6 : f32
      %66 = vector.broadcast %cst_37 : f32 to vector<1x128xf32>
      %67 = arith.addf %63, %66 : vector<1x128xf32>
      %68 = math.rsqrt %67 : vector<1x128xf32>
      %69 = vector.broadcast %68 : vector<1x128xf32> to vector<32x128xf32>
      %70 = arith.mulf %65, %69 : vector<32x128xf32>
      %71 = vector.broadcast %49 : vector<1x128xf32> to vector<32x128xf32>
      %72 = arith.mulf %70, %71 : vector<32x128xf32>
      %73 = vector.broadcast %50 : vector<1x128xf32> to vector<32x128xf32>
      %74 = arith.addf %72, %73 : vector<32x128xf32>
      %cst_38 = arith.constant 0.000000e+00 : f32
      %75 = vector.broadcast %cst_38 : f32 to vector<32x128xf32>
      %76 = arith.cmpf ogt, %74, %75 : vector<32x128xf32>
      %cst_39 = arith.constant 2.000000e-01 : f32
      %77 = vector.broadcast %cst_39 : f32 to vector<32x128xf32>
      %78 = arith.mulf %77, %74 : vector<32x128xf32>
      %79 = arith.select %76, %74, %78 : vector<32x128xi1>, vector<32x128xf32>
      %80 = arith.truncf %79 : vector<32x128xf32> to vector<32x128xbf16>
      %c0_40 = arith.constant 0 : index
      %c0_41 = arith.constant 0 : index
      %81 = vector.load %arg9[%c0_40, %c0_41] : memref<128x256xbf16, #tpu.memory_space<vmem>>, vector<128x256xbf16>
      %cst_42 = arith.constant dense<0.000000e+00> : vector<32x256xf32>
      %82 = tpu.matmul %80, %81, %cst_42 {dimension_numbers = #tpu.dot_dimension_numbers<[1], [0], [0], [1], [0, 0, 1, 1], [], []>} : vector<32x128xbf16>, vector<128x256xbf16>, vector<32x256xf32> -> vector<32x256xf32>
      %c0_43 = arith.constant 0 : index
      %c0_44 = arith.constant 0 : index
      %83 = vector.load %arg10[%c0_43, %c0_44] : memref<1x256xf32, #tpu.memory_space<vmem>>, vector<1x256xf32>
      %c0_45 = arith.constant 0 : index
      %c0_46 = arith.constant 0 : index
      %84 = vector.load %arg11[%c0_45, %c0_46] : memref<1x256xf32, #tpu.memory_space<vmem>>, vector<1x256xf32>
      %cst_47 = arith.constant dense<0.000000e+00> : vector<256xf32>
      %85 = vector.multi_reduction <add>, %82, %cst_47 [0] : vector<32x256xf32> to vector<256xf32>
      %86 = vector.shape_cast %85 : vector<256xf32> to vector<1x256xf32>
      %87 = arith.mulf %82, %82 : vector<32x256xf32>
      %cst_48 = arith.constant dense<0.000000e+00> : vector<256xf32>
      %88 = vector.multi_reduction <add>, %87, %cst_48 [0] : vector<32x256xf32> to vector<256xf32>
      %89 = vector.shape_cast %88 : vector<256xf32> to vector<1x256xf32>
      %cst_49 = arith.constant 3.125000e-02 : f32
      %90 = vector.broadcast %cst_49 : f32 to vector<1x256xf32>
      %91 = arith.mulf %86, %90 : vector<1x256xf32>
      %cst_50 = arith.constant 3.125000e-02 : f32
      %92 = vector.broadcast %cst_50 : f32 to vector<1x256xf32>
      %93 = arith.mulf %89, %92 : vector<1x256xf32>
      %94 = arith.mulf %91, %91 : vector<1x256xf32>
      %95 = arith.subf %93, %94 : vector<1x256xf32>
      %cst_51 = arith.constant 0.000000e+00 : f32
      %96 = vector.broadcast %cst_51 : f32 to vector<1x256xf32>
      %97 = arith.maximumf %95, %96 : vector<1x256xf32>
      %98 = vector.broadcast %91 : vector<1x256xf32> to vector<32x256xf32>
      %99 = arith.subf %82, %98 : vector<32x256xf32>
      %cst_52 = arith.constant 9.99999974E-6 : f32
      %100 = vector.broadcast %cst_52 : f32 to vector<1x256xf32>
      %101 = arith.addf %97, %100 : vector<1x256xf32>
      %102 = math.rsqrt %101 : vector<1x256xf32>
      %103 = vector.broadcast %102 : vector<1x256xf32> to vector<32x256xf32>
      %104 = arith.mulf %99, %103 : vector<32x256xf32>
      %105 = vector.broadcast %83 : vector<1x256xf32> to vector<32x256xf32>
      %106 = arith.mulf %104, %105 : vector<32x256xf32>
      %107 = vector.broadcast %84 : vector<1x256xf32> to vector<32x256xf32>
      %108 = arith.addf %106, %107 : vector<32x256xf32>
      %cst_53 = arith.constant 0.000000e+00 : f32
      %109 = vector.broadcast %cst_53 : f32 to vector<32x256xf32>
      %110 = arith.cmpf ogt, %108, %109 : vector<32x256xf32>
      %cst_54 = arith.constant 2.000000e-01 : f32
      %111 = vector.broadcast %cst_54 : f32 to vector<32x256xf32>
      %112 = arith.mulf %111, %108 : vector<32x256xf32>
      %113 = arith.select %110, %108, %112 : vector<32x256xi1>, vector<32x256xf32>
      %114 = arith.truncf %113 : vector<32x256xf32> to vector<32x256xbf16>
      %c0_55 = arith.constant 0 : index
      %c0_56 = arith.constant 0 : index
      %115 = vector.load %arg15[%c0_55, %c0_56] : memref<32x256xbf16, #tpu.memory_space<vmem>>, vector<32x256xbf16>
      tpu.vector_store %arg15[%c0_55, %c0_56], %114 {strides = array<i32>} : memref<32x256xbf16, #tpu.memory_space<vmem>>, vector<32x256xbf16>,
    } else {
    }
    %c0 = arith.constant 0 : index
    %c0_1 = arith.constant 0 : index
    %3 = vector.load %arg15[%c0, %c0_1] : memref<32x256xbf16, #tpu.memory_space<vmem>>, vector<32x256xbf16>
    %c0_2 = arith.constant 0 : index
    %c0_3 = arith.constant 0 : index
    %4 = vector.load %arg12[%c0_2, %c0_3] : memref<256x512xbf16, #tpu.memory_space<vmem>>, vector<256x512xbf16>
    %cst = arith.constant dense<0.000000e+00> : vector<32x512xf32>
    %5 = tpu.matmul %3, %4, %cst {dimension_numbers = #tpu.dot_dimension_numbers<[1], [0], [0], [1], [0, 0, 1, 1], [], []>} : vector<32x256xbf16>, vector<256x512xbf16>, vector<32x512xf32> -> vector<32x512xf32>
    %c0_4 = arith.constant 0 : index
    %c0_5 = arith.constant 0 : index
    %6 = vector.load %arg13[%c0_4, %c0_5] : memref<1x512xf32, #tpu.memory_space<vmem>>, vector<1x512xf32>
    %7 = vector.broadcast %6 : vector<1x512xf32> to vector<32x512xf32>
    %8 = arith.addf %5, %7 : vector<32x512xf32>
    %9 = math.tanh %8 : vector<32x512xf32>
    %c0_6 = arith.constant 0 : index
    %c0_7 = arith.constant 0 : index
    %10 = vector.load %arg14[%c0_6, %c0_7] : memref<32x512xf32, #tpu.memory_space<vmem>>, vector<32x512xf32>
    tpu.vector_store %arg14[%c0_6, %c0_7], %9 {strides = array<i32>} : memref<32x512xf32, #tpu.memory_space<vmem>>, vector<32x512xf32>,
    return
  }
  func.func @transform_0(%arg0: i32, %arg1: i32) -> (i32, i32) {
    %c0_i32 = arith.constant 0 : i32
    %c0_i32_0 = arith.constant 0 : i32
    %c0_i32_1 = arith.constant 0 : i32
    return %c0_i32, %c0_i32_0 : i32, i32
  }
  func.func @transform_1(%arg0: i32, %arg1: i32) -> (i32, i32) {
    %c0_i32 = arith.constant 0 : i32
    %c0_i32_0 = arith.constant 0 : i32
    %c0_i32_1 = arith.constant 0 : i32
    return %c0_i32, %c0_i32_0 : i32, i32
  }
  func.func @transform_2(%arg0: i32, %arg1: i32) -> (i32, i32) {
    %c0_i32 = arith.constant 0 : i32
    %c0_i32_0 = arith.constant 0 : i32
    %c0_i32_1 = arith.constant 0 : i32
    return %c0_i32, %c0_i32_0 : i32, i32
  }
  func.func @transform_3(%arg0: i32, %arg1: i32) -> (i32, i32) {
    %c0_i32 = arith.constant 0 : i32
    %c0_i32_0 = arith.constant 0 : i32
    %c0_i32_1 = arith.constant 0 : i32
    return %c0_i32, %c0_i32_0 : i32, i32
  }
  func.func @transform_4(%arg0: i32, %arg1: i32) -> (i32, i32) {
    %c0_i32 = arith.constant 0 : i32
    %c0_i32_0 = arith.constant 0 : i32
    %c0_i32_1 = arith.constant 0 : i32
    return %c0_i32, %c0_i32_0 : i32, i32
  }
  func.func @transform_5(%arg0: i32, %arg1: i32) -> (i32, i32) {
    %c0_i32 = arith.constant 0 : i32
    %c0_i32_0 = arith.constant 0 : i32
    %c0_i32_1 = arith.constant 0 : i32
    return %c0_i32, %c0_i32_0 : i32, i32
  }
  func.func @transform_6(%arg0: i32, %arg1: i32) -> (i32, i32) {
    %c0_i32 = arith.constant 0 : i32
    %c0_i32_0 = arith.constant 0 : i32
    %c0_i32_1 = arith.constant 0 : i32
    return %c0_i32, %c0_i32_0 : i32, i32
  }
  func.func @transform_7(%arg0: i32, %arg1: i32) -> (i32, i32) {
    %c0_i32 = arith.constant 0 : i32
    %c0_i32_0 = arith.constant 0 : i32
    %c0_i32_1 = arith.constant 0 : i32
    return %c0_i32, %c0_i32_0 : i32, i32
  }
  func.func @transform_8(%arg0: i32, %arg1: i32) -> (i32, i32) {
    %c0_i32 = arith.constant 0 : i32
    %c0_i32_0 = arith.constant 0 : i32
    %c0_i32_1 = arith.constant 0 : i32
    return %c0_i32, %c0_i32_0 : i32, i32
  }
  func.func @transform_9(%arg0: i32, %arg1: i32) -> (i32, i32) {
    %c0_i32 = arith.constant 0 : i32
    %c0_i32_0 = arith.constant 0 : i32
    %c0_i32_1 = arith.constant 0 : i32
    return %c0_i32, %c0_i32_0 : i32, i32
  }
  func.func @transform_10(%arg0: i32, %arg1: i32) -> (i32, i32) {
    %c1_i32 = arith.constant 1 : i32
    %0 = arith.muli %arg0, %c1_i32 : i32
    %1 = arith.addi %0, %arg1 : i32
    %c0_i32 = arith.constant 0 : i32
    %c0_i32_0 = arith.constant 0 : i32
    return %c0_i32, %1 : i32, i32
  }
  func.func @transform_11(%arg0: i32, %arg1: i32) -> (i32, i32) {
    %c1_i32 = arith.constant 1 : i32
    %0 = arith.muli %arg0, %c1_i32 : i32
    %1 = arith.addi %0, %arg1 : i32
    %c0_i32 = arith.constant 0 : i32
    %c0_i32_0 = arith.constant 0 : i32
    return %c0_i32, %1 : i32, i32
  }
  func.func @transform_12(%arg0: i32, %arg1: i32) -> (i32, i32) {
    %c1_i32 = arith.constant 1 : i32
    %0 = arith.muli %arg0, %c1_i32 : i32
    %1 = arith.addi %0, %arg1 : i32
    %c0_i32 = arith.constant 0 : i32
    %c0_i32_0 = arith.constant 0 : i32
    return %c0_i32, %1 : i32, i32
  }
}

</mosaic_0001>

<bundles_post_ra>
// kernel: basic_decoder.1
= control target key start
LH: loop header
LB: loop body
LE: loop exit
PB: predicated region body
PF: predicated region fallthrough
CT: control target
= control target key end

     0   :  { %s5631_s0 = inlined_call_operand.vmem [shape: f32[32,32], index: 0, kind: input, shape index: {}]   ;;  %s5632_s1 = inlined_call_operand.vmem [shape: bf16[32,64], index: 1, kind: input, shape index: {}]   ;;  %s5633_s2 = inlined_call_operand.vmem [shape: f32[1,64], index: 2, kind: input, shape index: {}]   ;;  %s5634_s3 = inlined_call_operand.vmem [shape: f32[1,64], index: 3, kind: input, shape index: {}]   ;;  %s5635_s4 = inlined_call_operand.vmem [shape: bf16[64,128], index: 4, kind: input, shape index: {}]   ;;  %s5636_s5 = inlined_call_operand.vmem [shape: f32[1,128], index: 5, kind: input, shape index: {}]   ;;  %s5637_s6 = inlined_call_operand.vmem [shape: f32[1,128], index: 6, kind: input, shape index: {}]   ;;  %s5638_s7 = inlined_call_operand.vmem [shape: bf16[128,256], index: 7, kind: input, shape index: {}]   ;;  %s5639_s8 = inlined_call_operand.vmem [shape: f32[1,256], index: 8, kind: input, shape index: {}]   ;;  %s5640_s9 = inlined_call_operand.vmem [shape: f32[1,256], index: 9, kind: input, shape index: {}]   ;;  %s5641_s10 = inlined_call_operand.vmem [shape: bf16[256,784], index: 10, kind: input, shape index: {}]   ;;  %s5642_s11 = inlined_call_operand.vmem [shape: f32[1,784], index: 11, kind: input, shape index: {}]   ;;  %s5643_s12 = inlined_call_operand.vmem [shape: f32[32,784], index: 12, kind: output, shape index: {}]  }
   0x1   :  { %5649 = sst [smem:[#allocation11_spill]] %s5641_s10 }
   0x2   :  { %5650 = sst [smem:[#allocation12_spill]] %s5642_s11 }
   0x3   :  { %5651 = sst [smem:[#allocation13_spill]] %s5643_s12 }
   0x4   :  { %s4084_s21 = smov 0   ;;  %s4086_s22 = smov 0  }
   0x5   :  { %s4088_s23 = smov 0   ;;  %s4090_s24 = smov 0  }
   0x6   :  { %s4092_s25 = smov 0  }
   0x7 LB: > { %5652 = sst [smem:[#allocation5_spill]] %s3872_s22  ;;  %s34_s26 = sadd.s32 1, %s3880_s24  ;;  %s3884_s25 = sphi %s4092_s25, %s22_s25   ;;  %s3880_s24 = sphi %s4090_s24, %s5706_s24   ;;  %s3876_s23 = sphi %s4088_s23, %s5705_s23   ;;  %s3872_s22 = sphi %s4086_s22, %s5704_s22   ;;  %s3868_s21 = sphi %s4084_s21, %s5703_s21  }
   0x8   : > { %5653 = sst [smem:[#allocation6_spill]] %s3876_s23  ;;  %s3033_s27 = sadd.s32 4294967295, %s3884_s25  }
   0x9   : > { %5654 = sst [smem:[#allocation7_spill]] %s3880_s24  ;;  %p36_p0 = scmp.ge.s32.totalorder %s34_s26, 2 }
   0xa   : > { %p260_p1 = scmp.ne.s32.totalorder %s3872_s22, %s3868_s21  ;;  %p261_p2 = scmp.eq.s32.totalorder %s3884_s25, 0 }
   0xb   : > { %s5708_s26 = smov (%p36_p0, %s34_s26), 0  ;;  %p320_p4 = scmp.eq.s32.totalorder %s3033_s27, 1 }
   0xc   : > { %5655 = sst [smem:[#allocation8_spill]] %s5708_s26  ;;  %p262_p3 = por %p261_p2, %p260_p1 }
   0xd   : > { %s250_s28 = ssub.s32 %s3880_s24, %s5708_s26  ;;  %s253_s29 = sadd.s32 1, %s3872_s22 }
   0xe   : > { %p251_p5 = scmp.eq.s32.totalorder %s250_s28, 0  ;;  %p4119_p6 = por %p320_p4, %p260_p1 }
   0xf   : > { %p3036_p7 = scmp.ge.s32.totalorder %s3884_s25, 2 }
  0x10   : > { %s5656_s30 = scalar_select %p4119_p6, 1, 0 }
  0x11   : > { %s4124_s13 = scalar_select %p251_p5, %s3872_s22, %s253_s29  }
  0x12   : > { %5657 = sst [smem:[#allocation9_spill]] %s5656_s30  ;;  %372 = sbr.rel (%p3036_p7) target bundleno = 254 (0xfe), region = 56 }
  0x13   : > { %5658 = sst [smem:[#allocation10_spill]] %s4124_s13 }
  0x17   : > { %375 = sbr.rel (!%p262_p3) target bundleno = 254 (0xfe), region = 60  ;;  %s377_s14 = sand.u32 (%p262_p3), 1, %s3872_s22  }
  0x18   : > { %s3038_s15 = sshll.u32 (%p262_p3), %s3880_s24, 2  ;;  %s3037_s16 = sshll.u32 (%p262_p3), %s377_s14, 9 }
  0x19   : > { %s382_s17 = ssub.s32 (%p262_p3), 7, %s3038_s15  ;;  %s3203_s18 = sshll.u32 (%p262_p3), %s3880_s24, 4 }
  0x1a   : > { %p383_p8 = scmp.lt.s32.totalorder (%p262_p3), %s382_s17, 4  ;;  %s5659_s10 = sld [smem:[#allocation11_spill]] (%p262_p3) }
  0x1b   : > { %s4137_s26 = scalar_lea.vmem (%p262_p3), [#allocation3], %s3037_s16  }
  0x1c   : > { %s5710_s17 = smov (!%p383_p8, %s382_s17), 4 }
  0x1d   : > { %s3039_s28 = sshll.u32 %s5710_s17, 11  ;;  %s4135_s29 = sshll.u32 %s5710_s17, 2 }
  0x1e   : > { %p3043_p9 = scmp.eq.s32.totalorder %s3039_s28, 0 }
  0x1f   : > { %p393_p10 = scmp.lt.u32.totalorder (!%p3043_p9), %s4135_s29, 8 }
  0x20   : > { %s4133_s27 = scalar_lea.vmem %s5659_s10, %s3203_s18   ;;  %392 = sbr.rel (%p3043_p9) target bundleno = 254 (0xfe), region = 64 }
  0x25   : > { %396 = sbr.rel (%p393_p10) target bundleno = 215 (0xd7), region = 68  ;;  %s4141_s14 = sand.u32 (!%p393_p10), 7, %s4135_s29  }
  0x26   : > { %p475_p11 = scmp.eq.s32.totalorder (!%p393_p10), %s4141_s14, 0  ;;  %p3044_p12 = scmp.ne.s32.totalorder (!%p393_p10), %s4141_s14, 0 }
  0x2a   : > { %478 = sbr.rel (%p3044_p12) target bundleno = 112 (0x70), region = 83  ;;  %s5645_s15 = sshrl.u32 (!%p3044_p12), %s4135_s29, 3 }
  0x2b   : > { %s4148_s17 = sshrl.u32 (!%p3044_p12), %s5645_s15, 1 }
  0x2c   : > { %p3045_p13 = scmp.le.s32.totalorder (!%p3044_p12), %s4148_s17, 0 }
  0x2f   : > { %2891 = sbr.rel (%p3045_p13) target bundleno = 85 (0x55), region = 272  ;;  %s5660_s16 = smov (!%p3045_p13), %s4137_s26 }
  0x30   : > { %s5661_s18 = smov (!%p3045_p13), %s4133_s27  ;;  %s4157_s19 = smov (!%p3045_p13), 0  }
  0x31   : > { %s4159_s20 = smov (!%p3045_p13), 0  }
  0x34 LB: >> { %v492_v0 = vld [vmem:[%s3892_s18] sm:$0xff]  ;;  %v494_v1 = vld [vmem:[%s3892_s18 + $0x8] sm:$0xff]  ;;  %s620_s28 = sadd.s32 1, %s3896_s19  ;;  %v500_v4 = vld [vmem:[%s3892_s18 + $0x38] sm:$0xff]  ;;  %s486_s20 = sadd.s32 1, %s3900_s20   ;;  %s3900_s20 = sphi %s4159_s20, %s486_s20   ;;  %s3896_s19 = sphi %s4157_s19, %s5664_s19   ;;  %s3892_s18 = sphi %s5661_s18, %s5663_s18   ;;  %s3888_s16 = sphi %s5660_s16, %s5662_s16  }
  0x35   : >> { %v496_v2 = vld [vmem:[%s3892_s18 + $0x1c] sm:$0xff]  ;;  %493 = vst [vmem:[%s3888_s16] sm:$0xff] %v492_v0  ;;  %495 = vst [vmem:[%s3888_s16 + $0x8] sm:$0xff] %v494_v1  ;;  %v498_v3 = vld [vmem:[%s3892_s18 + $0x24] sm:$0xff]  ;;  %p621_p0 = scmp.ge.s32.totalorder %s620_s28, %s4148_s17  ;;  %p485_p1 = scmp.ge.s32.totalorder %s486_s20, %s4148_s17 }
  0x36   : >> { %497 = vst [vmem:[%s3888_s16 + $0x10] sm:$0xff] %v496_v2  ;;  %v502_v5 = vld [vmem:[%s3892_s18 + $0x40] sm:$0xff]  ;;  %499 = vst [vmem:[%s3888_s16 + $0x18] sm:$0xff] %v498_v3  ;;  %v504_v6 = vld [vmem:[%s3892_s18 + $0x54] sm:$0xff] }
  0x37   : >> { %501 = vst [vmem:[%s3888_s16 + $0x20] sm:$0xff] %v500_v4  ;;  %503 = vst [vmem:[%s3888_s16 + $0x28] sm:$0xff] %v502_v5  ;;  %v506_v7 = vld [vmem:[%s3892_s18 + $0x5c] sm:$0xff]  ;;  %v508_v8 = vld [vmem:[%s3892_s18 + $0x70] sm:$0xff]  ;;  %s5712_s28 = smov (%p621_p0, %s620_s28), 0 }
  0x38   : >> { %505 = vst [vmem:[%s3888_s16 + $0x30] sm:$0xff] %v504_v6  ;;  %507 = vst [vmem:[%s3888_s16 + $0x38] sm:$0xff] %v506_v7  ;;  %v510_v9 = vld [vmem:[%s3892_s18 + $0x78] sm:$0xff]  ;;  %v512_v10 = vld [vmem:[%s3892_s18 + $0x8c] sm:$0xff]  ;;  %s3046_s19 = sshll.u32 %s5712_s28, 4 }
  0x39   : >> { %509 = vst [vmem:[%s3888_s16 + $0x40] sm:$0xff] %v508_v8  ;;  %v514_v11 = vld [vmem:[%s3892_s18 + $0x94] sm:$0xff]  ;;  %511 = vst [vmem:[%s3888_s16 + $0x48] sm:$0xff] %v510_v9  ;;  %v516_v12 = vld [vmem:[%s3892_s18 + $0xa8] sm:$0xff]  ;;  %s4215_s15 = scalar_lea.vmem %s4133_s27, %s3046_s19   ;;  %s4218_s10 = scalar_lea.vmem %s4137_s26, %s3046_s19 [#allocation3]  }
  0x3a   : >> { %513 = vst [vmem:[%s3888_s16 + $0x50] sm:$0xff] %v512_v10  ;;  %515 = vst [vmem:[%s3888_s16 + $0x58] sm:$0xff] %v514_v11  ;;  %v518_v13 = vld [vmem:[%s3892_s18 + $0xb0] sm:$0xff]  ;;  %v520_v14 = vld [vmem:[%s3892_s18 + $0xc4] sm:$0xff]  ;;  %s5664_s19 = smov %s5712_s28 }
  0x3b   : >> { %517 = vst [vmem:[%s3888_s16 + $0x60] sm:$0xff] %v516_v12  ;;  %519 = vst [vmem:[%s3888_s16 + $0x68] sm:$0xff] %v518_v13  ;;  %v522_v15 = vld [vmem:[%s3892_s18 + $0xcc] sm:$0xff]  ;;  %v524_v16 = vld [vmem:[%s3892_s18 + $0xe0] sm:$0xff] }
  0x3c   : >> { %521 = vst [vmem:[%s3888_s16 + $0x70] sm:$0xff] %v520_v14  ;;  %v526_v17 = vld [vmem:[%s3892_s18 + $0xe8] sm:$0xff]  ;;  %523 = vst [vmem:[%s3888_s16 + $0x78] sm:$0xff] %v522_v15  ;;  %v528_v18 = vld [vmem:[%s3892_s18 + $0xfc] sm:$0xff] }
  0x3d   : >> { %525 = vst [vmem:[%s3888_s16 + $0x80] sm:$0xff] %v524_v16  ;;  %527 = vst [vmem:[%s3888_s16 + $0x88] sm:$0xff] %v526_v17  ;;  %v530_v19 = vld [vmem:[%s3892_s18 + $0x104] sm:$0xff]  ;;  %v532_v20 = vld [vmem:[%s3892_s18 + $0x118] sm:$0xff] }
  0x3e   : >> { %529 = vst [vmem:[%s3888_s16 + $0x90] sm:$0xff] %v528_v18  ;;  %531 = vst [vmem:[%s3888_s16 + $0x98] sm:$0xff] %v530_v19  ;;  %v534_v21 = vld [vmem:[%s3892_s18 + $0x120] sm:$0xff]  ;;  %v536_v22 = vld [vmem:[%s3892_s18 + $0x134] sm:$0xff] }
  0x3f   : >> { %533 = vst [vmem:[%s3888_s16 + $0xa0] sm:$0xff] %v532_v20  ;;  %v538_v23 = vld [vmem:[%s3892_s18 + $0x13c] sm:$0xff]  ;;  %535 = vst [vmem:[%s3888_s16 + $0xa8] sm:$0xff] %v534_v21  ;;  %v540_v24 = vld [vmem:[%s3892_s18 + $0x150] sm:$0xff] }
  0x40   : >> { %537 = vst [vmem:[%s3888_s16 + $0xb0] sm:$0xff] %v536_v22  ;;  %539 = vst [vmem:[%s3888_s16 + $0xb8] sm:$0xff] %v538_v23  ;;  %v542_v25 = vld [vmem:[%s3892_s18 + $0x158] sm:$0xff]  ;;  %v544_v26 = vld [vmem:[%s3892_s18 + $0x16c] sm:$0xff] }
  0x41   : >> { %541 = vst [vmem:[%s3888_s16 + $0xc0] sm:$0xff] %v540_v24  ;;  %543 = vst [vmem:[%s3888_s16 + $0xc8] sm:$0xff] %v542_v25  ;;  %v546_v27 = vld [vmem:[%s3892_s18 + $0x174] sm:$0xff]  ;;  %v548_v28 = vld [vmem:[%s3892_s18 + $0x188] sm:$0xff] }
  0x42   : >> { %545 = vst [vmem:[%s3888_s16 + $0xd0] sm:$0xff] %v544_v26  ;;  %v550_v29 = vld [vmem:[%s3892_s18 + $0x190] sm:$0xff]  ;;  %547 = vst [vmem:[%s3888_s16 + $0xd8] sm:$0xff] %v546_v27  ;;  %v552_v30 = vld [vmem:[%s3892_s18 + $0x1a4] sm:$0xff] }
  0x43   : >> { %549 = vst [vmem:[%s3888_s16 + $0xe0] sm:$0xff] %v548_v28  ;;  %551 = vst [vmem:[%s3888_s16 + $0xe8] sm:$0xff] %v550_v29  ;;  %v554_v31 = vld [vmem:[%s3892_s18 + $0x1ac] sm:$0xff]  ;;  %v556_v32 = vld [vmem:[%s3892_s18 + $0x1c0] sm:$0xff] }
  0x44   : >> { %553 = vst [vmem:[%s3888_s16 + $0xf0] sm:$0xff] %v552_v30  ;;  %555 = vst [vmem:[%s3888_s16 + $0xf8] sm:$0xff] %v554_v31  ;;  %v558_v33 = vld [vmem:[%s3892_s18 + $0x1c8] sm:$0xff]  ;;  %v560_v34 = vld [vmem:[%s3892_s18 + $0x1dc] sm:$0xff] }
  0x45   : >> { %557 = vst [vmem:[%s3888_s16 + $0x100] sm:$0xff] %v556_v32  ;;  %v562_v35 = vld [vmem:[%s3892_s18 + $0x1e4] sm:$0xff]  ;;  %559 = vst [vmem:[%s3888_s16 + $0x108] sm:$0xff] %v558_v33  ;;  %v564_v36 = vld [vmem:[%s3892_s18 + $0x1f8] sm:$0xff] }
  0x46   : >> { %561 = vst [vmem:[%s3888_s16 + $0x110] sm:$0xff] %v560_v34  ;;  %563 = vst [vmem:[%s3888_s16 + $0x118] sm:$0xff] %v562_v35  ;;  %v566_v37 = vld [vmem:[%s3892_s18 + $0x200] sm:$0xff]  ;;  %v568_v38 = vld [vmem:[%s3892_s18 + $0x214] sm:$0xff] }
  0x47   : >> { %565 = vst [vmem:[%s3888_s16 + $0x120] sm:$0xff] %v564_v36  ;;  %567 = vst [vmem:[%s3888_s16 + $0x128] sm:$0xff] %v566_v37  ;;  %v570_v39 = vld [vmem:[%s3892_s18 + $0x21c] sm:$0xff]  ;;  %v572_v40 = vld [vmem:[%s3892_s18 + $0x230] sm:$0xff] }
  0x48   : >> { %569 = vst [vmem:[%s3888_s16 + $0x130] sm:$0xff] %v568_v38  ;;  %v574_v41 = vld [vmem:[%s3892_s18 + $0x238] sm:$0xff]  ;;  %571 = vst [vmem:[%s3888_s16 + $0x138] sm:$0xff] %v570_v39  ;;  %v576_v42 = vld [vmem:[%s3892_s18 + $0x24c] sm:$0xff] }
  0x49   : >> { %573 = vst [vmem:[%s3888_s16 + $0x140] sm:$0xff] %v572_v40  ;;  %575 = vst [vmem:[%s3888_s16 + $0x148] sm:$0xff] %v574_v41  ;;  %v578_v43 = vld [vmem:[%s3892_s18 + $0x254] sm:$0xff]  ;;  %v580_v44 = vld [vmem:[%s3892_s18 + $0x268] sm:$0xff] }
  0x4a   : >> { %577 = vst [vmem:[%s3888_s16 + $0x150] sm:$0xff] %v576_v42  ;;  %579 = vst [vmem:[%s3888_s16 + $0x158] sm:$0xff] %v578_v43  ;;  %v582_v45 = vld [vmem:[%s3892_s18 + $0x270] sm:$0xff]  ;;  %v584_v46 = vld [vmem:[%s3892_s18 + $0x284] sm:$0xff] }
  0x4b   : >> { %581 = vst [vmem:[%s3888_s16 + $0x160] sm:$0xff] %v580_v44  ;;  %v586_v47 = vld [vmem:[%s3892_s18 + $0x28c] sm:$0xff]  ;;  %583 = vst [vmem:[%s3888_s16 + $0x168] sm:$0xff] %v582_v45  ;;  %v588_v48 = vld [vmem:[%s3892_s18 + $0x2a0] sm:$0xff] }
  0x4c   : >> { %585 = vst [vmem:[%s3888_s16 + $0x170] sm:$0xff] %v584_v46  ;;  %587 = vst [vmem:[%s3888_s16 + $0x178] sm:$0xff] %v586_v47  ;;  %v590_v49 = vld [vmem:[%s3892_s18 + $0x2a8] sm:$0xff]  ;;  %v592_v50 = vld [vmem:[%s3892_s18 + $0x2bc] sm:$0xff] }
  0x4d   : >> { %589 = vst [vmem:[%s3888_s16 + $0x180] sm:$0xff] %v588_v48  ;;  %591 = vst [vmem:[%s3888_s16 + $0x188] sm:$0xff] %v590_v49  ;;  %v594_v51 = vld [vmem:[%s3892_s18 + $0x2c4] sm:$0xff]  ;;  %v596_v52 = vld [vmem:[%s3892_s18 + $0x2d8] sm:$0xff] }
  0x4e   : >> { %593 = vst [vmem:[%s3888_s16 + $0x190] sm:$0xff] %v592_v50  ;;  %v598_v53 = vld [vmem:[%s3892_s18 + $0x2e0] sm:$0xff]  ;;  %595 = vst [vmem:[%s3888_s16 + $0x198] sm:$0xff] %v594_v51  ;;  %v600_v54 = vld [vmem:[%s3892_s18 + $0x2f4] sm:$0xff] }
  0x4f   : >> { %597 = vst [vmem:[%s3888_s16 + $0x1a0] sm:$0xff] %v596_v52  ;;  %599 = vst [vmem:[%s3888_s16 + $0x1a8] sm:$0xff] %v598_v53  ;;  %v602_v55 = vld [vmem:[%s3892_s18 + $0x2fc] sm:$0xff]  ;;  %v604_v56 = vld [vmem:[%s3892_s18 + $0x310] sm:$0xff] }
  0x50   : >> { %601 = vst [vmem:[%s3888_s16 + $0x1b0] sm:$0xff] %v600_v54  ;;  %603 = vst [vmem:[%s3888_s16 + $0x1b8] sm:$0xff] %v602_v55  ;;  %v606_v57 = vld [vmem:[%s3892_s18 + $0x318] sm:$0xff]  ;;  %v608_v58 = vld [vmem:[%s3892_s18 + $0x32c] sm:$0xff]  ;;  %488 = sbr.rel (!%p485_p1) target bundleno = 52 (0x34), region = 278 }
  0x51   : >> { %605 = vst [vmem:[%s3888_s16 + $0x1c0] sm:$0xff] %v604_v56  ;;  %v610_v59 = vld [vmem:[%s3892_s18 + $0x334] sm:$0xff]  ;;  %607 = vst [vmem:[%s3888_s16 + $0x1c8] sm:$0xff] %v606_v57  ;;  %v612_v60 = vld [vmem:[%s3892_s18 + $0x348] sm:$0xff] }
  0x52   : >> { %609 = vst [vmem:[%s3888_s16 + $0x1d0] sm:$0xff] %v608_v58  ;;  %611 = vst [vmem:[%s3888_s16 + $0x1d8] sm:$0xff] %v610_v59  ;;  %v614_v61 = vld [vmem:[%s3892_s18 + $0x350] sm:$0xff]  ;;  %v616_v62 = vld [vmem:[%s3892_s18 + $0x364] sm:$0xff] }
  0x53   : >> { %613 = vst [vmem:[%s3888_s16 + $0x1e0] sm:$0xff] %v612_v60  ;;  %615 = vst [vmem:[%s3888_s16 + $0x1e8] sm:$0xff] %v614_v61  ;;  %v618_v63 = vld [vmem:[%s3892_s18 + $0x36c] sm:$0xff]  ;;  %s5663_s18 = smov %s4215_s15 }
  0x54   : >> { %617 = vst [vmem:[%s3888_s16 + $0x1f0] sm:$0xff] %v616_v62  ;;  %619 = vst [vmem:[%s3888_s16 + $0x1f8] sm:$0xff] %v618_v63  ;;  %s5662_s16 = smov %s4218_s10 }
  0x55 PF: > { %s5665_s24 = sshrl.u32 %s4135_s29, 3  ;;  %s3204_s22 = sshll.u32 %s4148_s17, 8 }
  0x56   : > { %s4324_s13 = sand.u32 1, %s5665_s24   ;;  %s631_s12 = sshra.s32 %s3204_s22, 4 }
  0x57   : > { %s4328_s30 = scalar_lea.vmem %s4133_s27, %s631_s12   ;;  %s4331_s10 = scalar_lea.vmem %s4137_s26, %s631_s12 [#allocation3]  }
  0x58   : > { %p3051_p2 = scmp.le.s32.totalorder %s4324_s13, 0 }
  0x59   : > { %s5666_s15 = smov (!%p3051_p2), %s4331_s10  ;;  %s5667_s16 = smov (!%p3051_p2), %s4328_s30 }
  0x5a   : > { %2905 = sbr.rel (%p3051_p2) target bundleno = 112 (0x70), region = 283  ;;  %s4340_s18 = smov (!%p3051_p2), 0  }
  0x5b   : > { %s4342_s20 = smov (!%p3051_p2), 0  }
  0x5f LB: >> { %v647_v0 = vld [vmem:[%s3908_s16] sm:$0xff]  ;;  %v651_v2 = vld [vmem:[%s3908_s16 + $0x38] sm:$0xff]  ;;  %s711_s12 = sadd.s32 1, %s3912_s18  ;;  %v655_v4 = vld [vmem:[%s3908_s16 + $0x70] sm:$0xff]  ;;  %s641_s20 = sadd.s32 1, %s3916_s20   ;;  %s3916_s20 = sphi %s4342_s20, %s641_s20   ;;  %s3912_s18 = sphi %s4340_s18, %s5670_s18   ;;  %s3908_s16 = sphi %s5667_s16, %s5669_s16   ;;  %s3904_s15 = sphi %s5666_s15, %s5668_s15  }
  0x60   : >> { %v649_v1 = vld [vmem:[%s3908_s16 + $0x1c] sm:$0xff]  ;;  %648 = vst [vmem:[%s3904_s15] sm:$0xff] %v647_v0  ;;  %652 = vst [vmem:[%s3904_s15 + $0x20] sm:$0xff] %v651_v2  ;;  %v653_v3 = vld [vmem:[%s3908_s16 + $0x54] sm:$0xff]  ;;  %p712_p3 = scmp.ge.s32.totalorder %s711_s12, %s4324_s13  ;;  %p640_p4 = scmp.ge.s32.totalorder %s641_s20, %s4324_s13 }
  0x61   : >> { %650 = vst [vmem:[%s3904_s15 + $0x10] sm:$0xff] %v649_v1  ;;  %v657_v5 = vld [vmem:[%s3908_s16 + $0x8c] sm:$0xff]  ;;  %654 = vst [vmem:[%s3904_s15 + $0x30] sm:$0xff] %v653_v3  ;;  %v661_v7 = vld [vmem:[%s3908_s16 + $0xc4] sm:$0xff] }
  0x62   : >> { %656 = vst [vmem:[%s3904_s15 + $0x40] sm:$0xff] %v655_v4  ;;  %658 = vst [vmem:[%s3904_s15 + $0x50] sm:$0xff] %v657_v5  ;;  %v659_v6 = vld [vmem:[%s3908_s16 + $0xa8] sm:$0xff]  ;;  %v663_v8 = vld [vmem:[%s3908_s16 + $0xe0] sm:$0xff]  ;;  %s5714_s12 = smov (%p712_p3, %s711_s12), 0 }
  0x63   : >> { %660 = vst [vmem:[%s3904_s15 + $0x60] sm:$0xff] %v659_v6  ;;  %662 = vst [vmem:[%s3904_s15 + $0x70] sm:$0xff] %v661_v7  ;;  %v665_v9 = vld [vmem:[%s3908_s16 + $0xfc] sm:$0xff]  ;;  %v669_v11 = vld [vmem:[%s3908_s16 + $0x134] sm:$0xff]  ;;  %s3052_s22 = sshll.u32 %s5714_s12, 3  ;;  %s5670_s18 = smov %s5714_s12 }
  0x64   : >> { %664 = vst [vmem:[%s3904_s15 + $0x80] sm:$0xff] %v663_v8  ;;  %v667_v10 = vld [vmem:[%s3908_s16 + $0x118] sm:$0xff]  ;;  %666 = vst [vmem:[%s3904_s15 + $0x90] sm:$0xff] %v665_v9  ;;  %v671_v12 = vld [vmem:[%s3908_s16 + $0x150] sm:$0xff]  ;;  %s4398_s24 = scalar_lea.vmem %s4328_s30, %s3052_s22   ;;  %s717_s17 = scalar_lea.vmem %s4331_s10, %s3052_s22 [#allocation3]  }
  0x65   : >> { %668 = vst [vmem:[%s3904_s15 + $0xa0] sm:$0xff] %v667_v10  ;;  %670 = vst [vmem:[%s3904_s15 + $0xb0] sm:$0xff] %v669_v11  ;;  %v673_v13 = vld [vmem:[%s3908_s16 + $0x16c] sm:$0xff]  ;;  %v677_v15 = vld [vmem:[%s3908_s16 + $0x1a4] sm:$0xff] }
  0x66   : >> { %v675_v14 = vld [vmem:[%s3908_s16 + $0x188] sm:$0xff]  ;;  %672 = vst [vmem:[%s3904_s15 + $0xc0] sm:$0xff] %v671_v12  ;;  %674 = vst [vmem:[%s3904_s15 + $0xd0] sm:$0xff] %v673_v13  ;;  %v679_v16 = vld [vmem:[%s3908_s16 + $0x1c0] sm:$0xff] }
  0x67   : >> { %676 = vst [vmem:[%s3904_s15 + $0xe0] sm:$0xff] %v675_v14  ;;  %v681_v17 = vld [vmem:[%s3908_s16 + $0x1dc] sm:$0xff]  ;;  %678 = vst [vmem:[%s3904_s15 + $0xf0] sm:$0xff] %v677_v15  ;;  %v685_v19 = vld [vmem:[%s3908_s16 + $0x214] sm:$0xff] }
  0x68   : >> { %680 = vst [vmem:[%s3904_s15 + $0x100] sm:$0xff] %v679_v16  ;;  %682 = vst [vmem:[%s3904_s15 + $0x110] sm:$0xff] %v681_v17  ;;  %v683_v18 = vld [vmem:[%s3908_s16 + $0x1f8] sm:$0xff]  ;;  %v687_v20 = vld [vmem:[%s3908_s16 + $0x230] sm:$0xff] }
  0x69   : >> { %684 = vst [vmem:[%s3904_s15 + $0x120] sm:$0xff] %v683_v18  ;;  %686 = vst [vmem:[%s3904_s15 + $0x130] sm:$0xff] %v685_v19  ;;  %v689_v21 = vld [vmem:[%s3908_s16 + $0x24c] sm:$0xff]  ;;  %v693_v23 = vld [vmem:[%s3908_s16 + $0x284] sm:$0xff] }
  0x6a   : >> { %688 = vst [vmem:[%s3904_s15 + $0x140] sm:$0xff] %v687_v20  ;;  %v691_v22 = vld [vmem:[%s3908_s16 + $0x268] sm:$0xff]  ;;  %690 = vst [vmem:[%s3904_s15 + $0x150] sm:$0xff] %v689_v21  ;;  %v695_v24 = vld [vmem:[%s3908_s16 + $0x2a0] sm:$0xff] }
  0x6b   : >> { %692 = vst [vmem:[%s3904_s15 + $0x160] sm:$0xff] %v691_v22  ;;  %694 = vst [vmem:[%s3904_s15 + $0x170] sm:$0xff] %v693_v23  ;;  %v697_v25 = vld [vmem:[%s3908_s16 + $0x2bc] sm:$0xff]  ;;  %v701_v27 = vld [vmem:[%s3908_s16 + $0x2f4] sm:$0xff]  ;;  %643 = sbr.rel (!%p640_p4) target bundleno = 95 (0x5f), region = 289 }
  0x6c   : >> { %v699_v26 = vld [vmem:[%s3908_s16 + $0x2d8] sm:$0xff]  ;;  %696 = vst [vmem:[%s3904_s15 + $0x180] sm:$0xff] %v695_v24  ;;  %698 = vst [vmem:[%s3904_s15 + $0x190] sm:$0xff] %v697_v25  ;;  %v703_v28 = vld [vmem:[%s3908_s16 + $0x310] sm:$0xff] }
  0x6d   : >> { %700 = vst [vmem:[%s3904_s15 + $0x1a0] sm:$0xff] %v699_v26  ;;  %v705_v29 = vld [vmem:[%s3908_s16 + $0x32c] sm:$0xff]  ;;  %702 = vst [vmem:[%s3904_s15 + $0x1b0] sm:$0xff] %v701_v27  ;;  %v709_v31 = vld [vmem:[%s3908_s16 + $0x364] sm:$0xff] }
  0x6e   : >> { %704 = vst [vmem:[%s3904_s15 + $0x1c0] sm:$0xff] %v703_v28  ;;  %706 = vst [vmem:[%s3904_s15 + $0x1d0] sm:$0xff] %v705_v29  ;;  %v707_v30 = vld [vmem:[%s3908_s16 + $0x348] sm:$0xff]  ;;  %s5669_s16 = smov %s4398_s24 }
  0x6f   : >> { %708 = vst [vmem:[%s3904_s15 + $0x1e0] sm:$0xff] %v707_v30  ;;  %710 = vst [vmem:[%s3904_s15 + $0x1f0] sm:$0xff] %v709_v31  ;;  %s5668_s15 = smov %s717_s17 }
  0x70 PF: > { %720 = sbr.rel (%p475_p11) target bundleno = 215 (0xd7), region = 101  ;;  %s722_s28 = ssub.s32 (!%p475_p11), %s4135_s29, %s4141_s14 }
  0x71   : > { %s726_s19 = sshrl.u32 (!%p475_p11), %s4135_s29, 3  ;;  %s4444_s22 = scalar_lea.vmem (!%p475_p11), %s4133_s27, %s722_s28 }
  0x72   : > { %s4447_s24 = scalar_lea.vmem (!%p475_p11), %s4137_s26, %s722_s28 [#allocation3]  ;;  %s4451_s20 = sshrl.u32 (!%p475_p11), %s726_s19, 1 }
  0x73   : > { %p3054_p5 = scmp.le.s32.totalorder (!%p475_p11), %s4451_s20, 0 }
  0x75   : > { %2919 = sbr.rel (%p3054_p5) target bundleno = 155 (0x9b), region = 294  ;;  %s5671_s30 = smov (!%p3054_p5), %s4137_s26 }
  0x76   : > { %s5672_s13 = smov (!%p3054_p5), %s4133_s27  ;;  %s4460_s10 = smov (!%p3054_p5), 0  }
  0x77   : > { %s4462_s15 = smov (!%p3054_p5), 0  }
  0x7a LB: >> { %v739_v32 = vld [vmem:[%s3924_s13] sm:$0xff]  ;;  %v741_v33 = vld [vmem:[%s3924_s13 + $0x8] sm:$0xff]  ;;  %s867_s16 = sadd.s32 1, %s3928_s10  ;;  %v747_v36 = vld [vmem:[%s3924_s13 + $0x38] sm:$0xff]  ;;  %s733_s15 = sadd.s32 1, %s3932_s15   ;;  %s3932_s15 = sphi %s4462_s15, %s733_s15   ;;  %s3928_s10 = sphi %s4460_s10, %s5675_s10   ;;  %s3924_s13 = sphi %s5672_s13, %s5674_s13   ;;  %s3920_s30 = sphi %s5671_s30, %s5673_s30  }
  0x7b   : >> { %v743_v34 = vld [vmem:[%s3924_s13 + $0x1c] sm:$0xff]  ;;  %740 = vst [vmem:[%s3920_s30] sm:$0xff] %v739_v32  ;;  %742 = vst [vmem:[%s3920_s30 + $0x8] sm:$0xff] %v741_v33  ;;  %v745_v35 = vld [vmem:[%s3924_s13 + $0x24] sm:$0xff]  ;;  %p868_p7 = scmp.ge.s32.totalorder %s867_s16, %s4451_s20  ;;  %p732_p8 = scmp.ge.s32.totalorder %s733_s15, %s4451_s20 }
  0x7c   : >> { %744 = vst [vmem:[%s3920_s30 + $0x10] sm:$0xff] %v743_v34  ;;  %v749_v37 = vld [vmem:[%s3924_s13 + $0x40] sm:$0xff]  ;;  %746 = vst [vmem:[%s3920_s30 + $0x18] sm:$0xff] %v745_v35  ;;  %v751_v38 = vld [vmem:[%s3924_s13 + $0x54] sm:$0xff] }
  0x7d   : >> { %748 = vst [vmem:[%s3920_s30 + $0x20] sm:$0xff] %v747_v36  ;;  %750 = vst [vmem:[%s3920_s30 + $0x28] sm:$0xff] %v749_v37  ;;  %v753_v39 = vld [vmem:[%s3924_s13 + $0x5c] sm:$0xff]  ;;  %v755_v40 = vld [vmem:[%s3924_s13 + $0x70] sm:$0xff]  ;;  %s5716_s16 = smov (%p868_p7, %s867_s16), 0 }
  0x7e   : >> { %752 = vst [vmem:[%s3920_s30 + $0x30] sm:$0xff] %v751_v38  ;;  %754 = vst [vmem:[%s3920_s30 + $0x38] sm:$0xff] %v753_v39  ;;  %v757_v41 = vld [vmem:[%s3924_s13 + $0x78] sm:$0xff]  ;;  %v759_v42 = vld [vmem:[%s3924_s13 + $0x8c] sm:$0xff]  ;;  %s3055_s18 = sshll.u32 %s5716_s16, 4  ;;  %s5675_s10 = smov %s5716_s16 }
  0x7f   : >> { %756 = vst [vmem:[%s3920_s30 + $0x40] sm:$0xff] %v755_v40  ;;  %v761_v43 = vld [vmem:[%s3924_s13 + $0x94] sm:$0xff]  ;;  %758 = vst [vmem:[%s3920_s30 + $0x48] sm:$0xff] %v757_v41  ;;  %v763_v44 = vld [vmem:[%s3924_s13 + $0xa8] sm:$0xff]  ;;  %s4518_s12 = scalar_lea.vmem %s4133_s27, %s3055_s18   ;;  %s4521_s17 = scalar_lea.vmem %s4137_s26, %s3055_s18 [#allocation3]  }
  0x80   : >> { %760 = vst [vmem:[%s3920_s30 + $0x50] sm:$0xff] %v759_v42  ;;  %762 = vst [vmem:[%s3920_s30 + $0x58] sm:$0xff] %v761_v43  ;;  %v765_v45 = vld [vmem:[%s3924_s13 + $0xb0] sm:$0xff]  ;;  %v767_v46 = vld [vmem:[%s3924_s13 + $0xc4] sm:$0xff] }
  0x81   : >> { %764 = vst [vmem:[%s3920_s30 + $0x60] sm:$0xff] %v763_v44  ;;  %766 = vst [vmem:[%s3920_s30 + $0x68] sm:$0xff] %v765_v45  ;;  %v769_v47 = vld [vmem:[%s3924_s13 + $0xcc] sm:$0xff]  ;;  %v771_v48 = vld [vmem:[%s3924_s13 + $0xe0] sm:$0xff] }
  0x82   : >> { %768 = vst [vmem:[%s3920_s30 + $0x70] sm:$0xff] %v767_v46  ;;  %v773_v49 = vld [vmem:[%s3924_s13 + $0xe8] sm:$0xff]  ;;  %770 = vst [vmem:[%s3920_s30 + $0x78] sm:$0xff] %v769_v47  ;;  %v775_v50 = vld [vmem:[%s3924_s13 + $0xfc] sm:$0xff] }
  0x83   : >> { %772 = vst [vmem:[%s3920_s30 + $0x80] sm:$0xff] %v771_v48  ;;  %774 = vst [vmem:[%s3920_s30 + $0x88] sm:$0xff] %v773_v49  ;;  %v777_v51 = vld [vmem:[%s3924_s13 + $0x104] sm:$0xff]  ;;  %v779_v52 = vld [vmem:[%s3924_s13 + $0x118] sm:$0xff] }
  0x84   : >> { %776 = vst [vmem:[%s3920_s30 + $0x90] sm:$0xff] %v775_v50  ;;  %778 = vst [vmem:[%s3920_s30 + $0x98] sm:$0xff] %v777_v51  ;;  %v781_v53 = vld [vmem:[%s3924_s13 + $0x120] sm:$0xff]  ;;  %v783_v54 = vld [vmem:[%s3924_s13 + $0x134] sm:$0xff] }
  0x85   : >> { %780 = vst [vmem:[%s3920_s30 + $0xa0] sm:$0xff] %v779_v52  ;;  %v785_v55 = vld [vmem:[%s3924_s13 + $0x13c] sm:$0xff]  ;;  %782 = vst [vmem:[%s3920_s30 + $0xa8] sm:$0xff] %v781_v53  ;;  %v787_v56 = vld [vmem:[%s3924_s13 + $0x150] sm:$0xff] }
  0x86   : >> { %784 = vst [vmem:[%s3920_s30 + $0xb0] sm:$0xff] %v783_v54  ;;  %786 = vst [vmem:[%s3920_s30 + $0xb8] sm:$0xff] %v785_v55  ;;  %v789_v57 = vld [vmem:[%s3924_s13 + $0x158] sm:$0xff]  ;;  %v791_v58 = vld [vmem:[%s3924_s13 + $0x16c] sm:$0xff] }
  0x87   : >> { %788 = vst [vmem:[%s3920_s30 + $0xc0] sm:$0xff] %v787_v56  ;;  %790 = vst [vmem:[%s3920_s30 + $0xc8] sm:$0xff] %v789_v57  ;;  %v793_v59 = vld [vmem:[%s3924_s13 + $0x174] sm:$0xff]  ;;  %v795_v60 = vld [vmem:[%s3924_s13 + $0x188] sm:$0xff] }
  0x88   : >> { %792 = vst [vmem:[%s3920_s30 + $0xd0] sm:$0xff] %v791_v58  ;;  %v797_v61 = vld [vmem:[%s3924_s13 + $0x190] sm:$0xff]  ;;  %794 = vst [vmem:[%s3920_s30 + $0xd8] sm:$0xff] %v793_v59  ;;  %v799_v62 = vld [vmem:[%s3924_s13 + $0x1a4] sm:$0xff] }
  0x89   : >> { %796 = vst [vmem:[%s3920_s30 + $0xe0] sm:$0xff] %v795_v60  ;;  %798 = vst [vmem:[%s3920_s30 + $0xe8] sm:$0xff] %v797_v61  ;;  %v801_v63 = vld [vmem:[%s3924_s13 + $0x1ac] sm:$0xff]  ;;  %v803_v0 = vld [vmem:[%s3924_s13 + $0x1c0] sm:$0xff] }
  0x8a   : >> { %800 = vst [vmem:[%s3920_s30 + $0xf0] sm:$0xff] %v799_v62  ;;  %802 = vst [vmem:[%s3920_s30 + $0xf8] sm:$0xff] %v801_v63  ;;  %v805_v1 = vld [vmem:[%s3924_s13 + $0x1c8] sm:$0xff]  ;;  %v807_v2 = vld [vmem:[%s3924_s13 + $0x1dc] sm:$0xff] }
  0x8b   : >> { %804 = vst [vmem:[%s3920_s30 + $0x100] sm:$0xff] %v803_v0  ;;  %v809_v3 = vld [vmem:[%s3924_s13 + $0x1e4] sm:$0xff]  ;;  %806 = vst [vmem:[%s3920_s30 + $0x108] sm:$0xff] %v805_v1  ;;  %v811_v4 = vld [vmem:[%s3924_s13 + $0x1f8] sm:$0xff] }
  0x8c   : >> { %808 = vst [vmem:[%s3920_s30 + $0x110] sm:$0xff] %v807_v2  ;;  %810 = vst [vmem:[%s3920_s30 + $0x118] sm:$0xff] %v809_v3  ;;  %v813_v5 = vld [vmem:[%s3924_s13 + $0x200] sm:$0xff]  ;;  %v815_v6 = vld [vmem:[%s3924_s13 + $0x214] sm:$0xff] }
  0x8d   : >> { %812 = vst [vmem:[%s3920_s30 + $0x120] sm:$0xff] %v811_v4  ;;  %814 = vst [vmem:[%s3920_s30 + $0x128] sm:$0xff] %v813_v5  ;;  %v817_v7 = vld [vmem:[%s3924_s13 + $0x21c] sm:$0xff]  ;;  %v819_v8 = vld [vmem:[%s3924_s13 + $0x230] sm:$0xff] }
  0x8e   : >> { %816 = vst [vmem:[%s3920_s30 + $0x130] sm:$0xff] %v815_v6  ;;  %v821_v9 = vld [vmem:[%s3924_s13 + $0x238] sm:$0xff]  ;;  %818 = vst [vmem:[%s3920_s30 + $0x138] sm:$0xff] %v817_v7  ;;  %v823_v10 = vld [vmem:[%s3924_s13 + $0x24c] sm:$0xff] }
  0x8f   : >> { %820 = vst [vmem:[%s3920_s30 + $0x140] sm:$0xff] %v819_v8  ;;  %822 = vst [vmem:[%s3920_s30 + $0x148] sm:$0xff] %v821_v9  ;;  %v825_v11 = vld [vmem:[%s3924_s13 + $0x254] sm:$0xff]  ;;  %v827_v12 = vld [vmem:[%s3924_s13 + $0x268] sm:$0xff] }
  0x90   : >> { %824 = vst [vmem:[%s3920_s30 + $0x150] sm:$0xff] %v823_v10  ;;  %826 = vst [vmem:[%s3920_s30 + $0x158] sm:$0xff] %v825_v11  ;;  %v829_v13 = vld [vmem:[%s3924_s13 + $0x270] sm:$0xff]  ;;  %v831_v14 = vld [vmem:[%s3924_s13 + $0x284] sm:$0xff] }
  0x91   : >> { %828 = vst [vmem:[%s3920_s30 + $0x160] sm:$0xff] %v827_v12  ;;  %v833_v15 = vld [vmem:[%s3924_s13 + $0x28c] sm:$0xff]  ;;  %830 = vst [vmem:[%s3920_s30 + $0x168] sm:$0xff] %v829_v13  ;;  %v835_v16 = vld [vmem:[%s3924_s13 + $0x2a0] sm:$0xff] }
  0x92   : >> { %832 = vst [vmem:[%s3920_s30 + $0x170] sm:$0xff] %v831_v14  ;;  %834 = vst [vmem:[%s3920_s30 + $0x178] sm:$0xff] %v833_v15  ;;  %v837_v17 = vld [vmem:[%s3924_s13 + $0x2a8] sm:$0xff]  ;;  %v839_v18 = vld [vmem:[%s3924_s13 + $0x2bc] sm:$0xff] }
  0x93   : >> { %836 = vst [vmem:[%s3920_s30 + $0x180] sm:$0xff] %v835_v16  ;;  %838 = vst [vmem:[%s3920_s30 + $0x188] sm:$0xff] %v837_v17  ;;  %v841_v19 = vld [vmem:[%s3924_s13 + $0x2c4] sm:$0xff]  ;;  %v843_v20 = vld [vmem:[%s3924_s13 + $0x2d8] sm:$0xff] }
  0x94   : >> { %840 = vst [vmem:[%s3920_s30 + $0x190] sm:$0xff] %v839_v18  ;;  %v845_v21 = vld [vmem:[%s3924_s13 + $0x2e0] sm:$0xff]  ;;  %842 = vst [vmem:[%s3920_s30 + $0x198] sm:$0xff] %v841_v19  ;;  %v847_v22 = vld [vmem:[%s3924_s13 + $0x2f4] sm:$0xff] }
  0x95   : >> { %844 = vst [vmem:[%s3920_s30 + $0x1a0] sm:$0xff] %v843_v20  ;;  %846 = vst [vmem:[%s3920_s30 + $0x1a8] sm:$0xff] %v845_v21  ;;  %v849_v23 = vld [vmem:[%s3924_s13 + $0x2fc] sm:$0xff]  ;;  %v851_v24 = vld [vmem:[%s3924_s13 + $0x310] sm:$0xff] }
  0x96   : >> { %848 = vst [vmem:[%s3920_s30 + $0x1b0] sm:$0xff] %v847_v22  ;;  %850 = vst [vmem:[%s3920_s30 + $0x1b8] sm:$0xff] %v849_v23  ;;  %v853_v25 = vld [vmem:[%s3924_s13 + $0x318] sm:$0xff]  ;;  %v855_v26 = vld [vmem:[%s3924_s13 + $0x32c] sm:$0xff]  ;;  %735 = sbr.rel (!%p732_p8) target bundleno = 122 (0x7a), region = 300 }
  0x97   : >> { %852 = vst [vmem:[%s3920_s30 + $0x1c0] sm:$0xff] %v851_v24  ;;  %v857_v27 = vld [vmem:[%s3924_s13 + $0x334] sm:$0xff]  ;;  %854 = vst [vmem:[%s3920_s30 + $0x1c8] sm:$0xff] %v853_v25  ;;  %v859_v28 = vld [vmem:[%s3924_s13 + $0x348] sm:$0xff] }
  0x98   : >> { %856 = vst [vmem:[%s3920_s30 + $0x1d0] sm:$0xff] %v855_v26  ;;  %858 = vst [vmem:[%s3920_s30 + $0x1d8] sm:$0xff] %v857_v27  ;;  %v861_v29 = vld [vmem:[%s3924_s13 + $0x350] sm:$0xff]  ;;  %v863_v30 = vld [vmem:[%s3924_s13 + $0x364] sm:$0xff] }
  0x99   : >> { %860 = vst [vmem:[%s3920_s30 + $0x1e0] sm:$0xff] %v859_v28  ;;  %862 = vst [vmem:[%s3920_s30 + $0x1e8] sm:$0xff] %v861_v29  ;;  %v865_v31 = vld [vmem:[%s3924_s13 + $0x36c] sm:$0xff]  ;;  %s5674_s13 = smov %s4518_s12 }
  0x9a   : >> { %864 = vst [vmem:[%s3920_s30 + $0x1f0] sm:$0xff] %v863_v30  ;;  %866 = vst [vmem:[%s3920_s30 + $0x1f8] sm:$0xff] %v865_v31  ;;  %s5673_s30 = smov %s4521_s17 }
  0x9b PF: > { %s4627_s28 = sand.u32 1, %s726_s19   ;;  %s3206_s18 = sshll.u32 %s4451_s20, 8 }
  0x9c   : > { %s878_s11 = sshra.s32 %s3206_s18, 4  ;;  %p3060_p9 = scmp.le.s32.totalorder %s4627_s28, 0 }
  0x9d   : > { %s4631_s23 = scalar_lea.vmem %s4133_s27, %s878_s11   ;;  %s4634_s17 = scalar_lea.vmem %s4137_s26, %s878_s11 [#allocation3]  }
  0x9e   : > { %2933 = sbr.rel (%p3060_p9) target bundleno = 180 (0xb4), region = 305  ;;  %s5676_s30 = smov (!%p3060_p9), %s4634_s17 }
  0x9f   : > { %s5677_s13 = smov (!%p3060_p9), %s4631_s23  ;;  %s4643_s10 = smov (!%p3060_p9), 0  }
  0xa0   : > { %s4645_s15 = smov (!%p3060_p9), 0  }
  0xa3 LB: >> { %v894_v32 = vld [vmem:[%s3940_s13] sm:$0xff]  ;;  %v898_v34 = vld [vmem:[%s3940_s13 + $0x38] sm:$0xff]  ;;  %s958_s11 = sadd.s32 1, %s3944_s10  ;;  %v902_v36 = vld [vmem:[%s3940_s13 + $0x70] sm:$0xff]  ;;  %s888_s15 = sadd.s32 1, %s3948_s15   ;;  %s3948_s15 = sphi %s4645_s15, %s888_s15   ;;  %s3944_s10 = sphi %s4643_s10, %s5680_s10   ;;  %s3940_s13 = sphi %s5677_s13, %s5679_s13   ;;  %s3936_s30 = sphi %s5676_s30, %s5678_s30  }
  0xa4   : >> { %v896_v33 = vld [vmem:[%s3940_s13 + $0x1c] sm:$0xff]  ;;  %895 = vst [vmem:[%s3936_s30] sm:$0xff] %v894_v32  ;;  %899 = vst [vmem:[%s3936_s30 + $0x20] sm:$0xff] %v898_v34  ;;  %v900_v35 = vld [vmem:[%s3940_s13 + $0x54] sm:$0xff]  ;;  %p959_p10 = scmp.ge.s32.totalorder %s958_s11, %s4627_s28  ;;  %p887_p11 = scmp.ge.s32.totalorder %s888_s15, %s4627_s28 }
  0xa5   : >> { %897 = vst [vmem:[%s3936_s30 + $0x10] sm:$0xff] %v896_v33  ;;  %v904_v37 = vld [vmem:[%s3940_s13 + $0x8c] sm:$0xff]  ;;  %901 = vst [vmem:[%s3936_s30 + $0x30] sm:$0xff] %v900_v35  ;;  %v908_v39 = vld [vmem:[%s3940_s13 + $0xc4] sm:$0xff] }
  0xa6   : >> { %903 = vst [vmem:[%s3936_s30 + $0x40] sm:$0xff] %v902_v36  ;;  %905 = vst [vmem:[%s3936_s30 + $0x50] sm:$0xff] %v904_v37  ;;  %v906_v38 = vld [vmem:[%s3940_s13 + $0xa8] sm:$0xff]  ;;  %v910_v40 = vld [vmem:[%s3940_s13 + $0xe0] sm:$0xff]  ;;  %s5718_s11 = smov (%p959_p10, %s958_s11), 0 }
  0xa7   : >> { %907 = vst [vmem:[%s3936_s30 + $0x60] sm:$0xff] %v906_v38  ;;  %909 = vst [vmem:[%s3936_s30 + $0x70] sm:$0xff] %v908_v39  ;;  %v912_v41 = vld [vmem:[%s3940_s13 + $0xfc] sm:$0xff]  ;;  %v916_v43 = vld [vmem:[%s3940_s13 + $0x134] sm:$0xff]  ;;  %s3061_s19 = sshll.u32 %s5718_s11, 3  ;;  %s5680_s10 = smov %s5718_s11 }
  0xa8   : >> { %911 = vst [vmem:[%s3936_s30 + $0x80] sm:$0xff] %v910_v40  ;;  %v914_v42 = vld [vmem:[%s3940_s13 + $0x118] sm:$0xff]  ;;  %913 = vst [vmem:[%s3936_s30 + $0x90] sm:$0xff] %v912_v41  ;;  %v918_v44 = vld [vmem:[%s3940_s13 + $0x150] sm:$0xff]  ;;  %s4701_s20 = scalar_lea.vmem %s4631_s23, %s3061_s19   ;;  %s964_s16 = scalar_lea.vmem %s4634_s17, %s3061_s19 [#allocation3]  }
  0xa9   : >> { %915 = vst [vmem:[%s3936_s30 + $0xa0] sm:$0xff] %v914_v42  ;;  %917 = vst [vmem:[%s3936_s30 + $0xb0] sm:$0xff] %v916_v43  ;;  %v920_v45 = vld [vmem:[%s3940_s13 + $0x16c] sm:$0xff]  ;;  %v924_v47 = vld [vmem:[%s3940_s13 + $0x1a4] sm:$0xff] }
  0xaa   : >> { %v922_v46 = vld [vmem:[%s3940_s13 + $0x188] sm:$0xff]  ;;  %919 = vst [vmem:[%s3936_s30 + $0xc0] sm:$0xff] %v918_v44  ;;  %921 = vst [vmem:[%s3936_s30 + $0xd0] sm:$0xff] %v920_v45  ;;  %v926_v48 = vld [vmem:[%s3940_s13 + $0x1c0] sm:$0xff] }
  0xab   : >> { %923 = vst [vmem:[%s3936_s30 + $0xe0] sm:$0xff] %v922_v46  ;;  %v928_v49 = vld [vmem:[%s3940_s13 + $0x1dc] sm:$0xff]  ;;  %925 = vst [vmem:[%s3936_s30 + $0xf0] sm:$0xff] %v924_v47  ;;  %v932_v51 = vld [vmem:[%s3940_s13 + $0x214] sm:$0xff] }
  0xac   : >> { %927 = vst [vmem:[%s3936_s30 + $0x100] sm:$0xff] %v926_v48  ;;  %929 = vst [vmem:[%s3936_s30 + $0x110] sm:$0xff] %v928_v49  ;;  %v930_v50 = vld [vmem:[%s3940_s13 + $0x1f8] sm:$0xff]  ;;  %v934_v52 = vld [vmem:[%s3940_s13 + $0x230] sm:$0xff] }
  0xad   : >> { %931 = vst [vmem:[%s3936_s30 + $0x120] sm:$0xff] %v930_v50  ;;  %933 = vst [vmem:[%s3936_s30 + $0x130] sm:$0xff] %v932_v51  ;;  %v936_v53 = vld [vmem:[%s3940_s13 + $0x24c] sm:$0xff]  ;;  %v940_v55 = vld [vmem:[%s3940_s13 + $0x284] sm:$0xff] }
  0xae   : >> { %935 = vst [vmem:[%s3936_s30 + $0x140] sm:$0xff] %v934_v52  ;;  %v938_v54 = vld [vmem:[%s3940_s13 + $0x268] sm:$0xff]  ;;  %937 = vst [vmem:[%s3936_s30 + $0x150] sm:$0xff] %v936_v53  ;;  %v942_v56 = vld [vmem:[%s3940_s13 + $0x2a0] sm:$0xff] }
  0xaf   : >> { %939 = vst [vmem:[%s3936_s30 + $0x160] sm:$0xff] %v938_v54  ;;  %941 = vst [vmem:[%s3936_s30 + $0x170] sm:$0xff] %v940_v55  ;;  %v944_v57 = vld [vmem:[%s3940_s13 + $0x2bc] sm:$0xff]  ;;  %v948_v59 = vld [vmem:[%s3940_s13 + $0x2f4] sm:$0xff]  ;;  %890 = sbr.rel (!%p887_p11) target bundleno = 163 (0xa3), region = 311 }
  0xb0   : >> { %v946_v58 = vld [vmem:[%s3940_s13 + $0x2d8] sm:$0xff]  ;;  %943 = vst [vmem:[%s3936_s30 + $0x180] sm:$0xff] %v942_v56  ;;  %945 = vst [vmem:[%s3936_s30 + $0x190] sm:$0xff] %v944_v57  ;;  %v950_v60 = vld [vmem:[%s3940_s13 + $0x310] sm:$0xff] }
  0xb1   : >> { %947 = vst [vmem:[%s3936_s30 + $0x1a0] sm:$0xff] %v946_v58  ;;  %v952_v61 = vld [vmem:[%s3940_s13 + $0x32c] sm:$0xff]  ;;  %949 = vst [vmem:[%s3936_s30 + $0x1b0] sm:$0xff] %v948_v59  ;;  %v956_v63 = vld [vmem:[%s3940_s13 + $0x364] sm:$0xff] }
  0xb2   : >> { %951 = vst [vmem:[%s3936_s30 + $0x1c0] sm:$0xff] %v950_v60  ;;  %953 = vst [vmem:[%s3936_s30 + $0x1d0] sm:$0xff] %v952_v61  ;;  %v954_v62 = vld [vmem:[%s3940_s13 + $0x348] sm:$0xff]  ;;  %s5679_s13 = smov %s4701_s20 }
  0xb3   : >> { %955 = vst [vmem:[%s3936_s30 + $0x1e0] sm:$0xff] %v954_v62  ;;  %957 = vst [vmem:[%s3936_s30 + $0x1f0] sm:$0xff] %v956_v63  ;;  %s5678_s30 = smov %s964_s16 }
  0xb4 PF: > { %s4014_s12 = smov 1  }
  0xb5   : > { %s965_s18 = sshll.u32 %s4014_s12, %s4141_s14 }
  0xb6   : > { %s4742_s15 = sadd.s32 4294967295, %s965_s18 }
  0xb7   : > { %v975_v0 = vld [vmem:[%s4444_s22] sm:%s4742_s15]  ;;  %v979_v2 = vld [vmem:[%s4444_s22 + $0x38] sm:%s4742_s15] }
  0xb8   : > { %v977_v1 = vld [vmem:[%s4444_s22 + $0x1c] sm:%s4742_s15]  ;;  %976 = vst [vmem:[%s4447_s24] sm:%s4742_s15] %v975_v0 }
  0xb9   : > { %978 = vst [vmem:[%s4447_s24 + $0x10] sm:%s4742_s15] %v977_v1  ;;  %v981_v3 = vld [vmem:[%s4444_s22 + $0x54] sm:%s4742_s15] }
  0xba   : > { %980 = vst [vmem:[%s4447_s24 + $0x20] sm:%s4742_s15] %v979_v2  ;;  %982 = vst [vmem:[%s4447_s24 + $0x30] sm:%s4742_s15] %v981_v3 }
  0xbb   : > { %v983_v4 = vld [vmem:[%s4444_s22 + $0x70] sm:%s4742_s15]  ;;  %v987_v6 = vld [vmem:[%s4444_s22 + $0xa8] sm:%s4742_s15] }
  0xbc   : > { %v985_v5 = vld [vmem:[%s4444_s22 + $0x8c] sm:%s4742_s15]  ;;  %984 = vst [vmem:[%s4447_s24 + $0x40] sm:%s4742_s15] %v983_v4 }
  0xbd   : > { %986 = vst [vmem:[%s4447_s24 + $0x50] sm:%s4742_s15] %v985_v5  ;;  %v989_v7 = vld [vmem:[%s4444_s22 + $0xc4] sm:%s4742_s15] }
  0xbe   : > { %988 = vst [vmem:[%s4447_s24 + $0x60] sm:%s4742_s15] %v987_v6  ;;  %990 = vst [vmem:[%s4447_s24 + $0x70] sm:%s4742_s15] %v989_v7 }
  0xbf   : > { %v991_v8 = vld [vmem:[%s4444_s22 + $0xe0] sm:%s4742_s15]  ;;  %v995_v10 = vld [vmem:[%s4444_s22 + $0x118] sm:%s4742_s15] }
  0xc0   : > { %v993_v9 = vld [vmem:[%s4444_s22 + $0xfc] sm:%s4742_s15]  ;;  %992 = vst [vmem:[%s4447_s24 + $0x80] sm:%s4742_s15] %v991_v8 }
  0xc1   : > { %994 = vst [vmem:[%s4447_s24 + $0x90] sm:%s4742_s15] %v993_v9  ;;  %v997_v11 = vld [vmem:[%s4444_s22 + $0x134] sm:%s4742_s15] }
  0xc2   : > { %996 = vst [vmem:[%s4447_s24 + $0xa0] sm:%s4742_s15] %v995_v10  ;;  %998 = vst [vmem:[%s4447_s24 + $0xb0] sm:%s4742_s15] %v997_v11 }
  0xc3   : > { %v999_v12 = vld [vmem:[%s4444_s22 + $0x150] sm:%s4742_s15]  ;;  %v1003_v14 = vld [vmem:[%s4444_s22 + $0x188] sm:%s4742_s15] }
  0xc4   : > { %v1001_v13 = vld [vmem:[%s4444_s22 + $0x16c] sm:%s4742_s15]  ;;  %1000 = vst [vmem:[%s4447_s24 + $0xc0] sm:%s4742_s15] %v999_v12 }
  0xc5   : > { %1002 = vst [vmem:[%s4447_s24 + $0xd0] sm:%s4742_s15] %v1001_v13  ;;  %v1005_v15 = vld [vmem:[%s4444_s22 + $0x1a4] sm:%s4742_s15] }
  0xc6   : > { %1004 = vst [vmem:[%s4447_s24 + $0xe0] sm:%s4742_s15] %v1003_v14  ;;  %1006 = vst [vmem:[%s4447_s24 + $0xf0] sm:%s4742_s15] %v1005_v15 }
  0xc7   : > { %v1007_v16 = vld [vmem:[%s4444_s22 + $0x1c0] sm:%s4742_s15]  ;;  %v1011_v18 = vld [vmem:[%s4444_s22 + $0x1f8] sm:%s4742_s15] }
  0xc8   : > { %v1009_v17 = vld [vmem:[%s4444_s22 + $0x1dc] sm:%s4742_s15]  ;;  %1008 = vst [vmem:[%s4447_s24 + $0x100] sm:%s4742_s15] %v1007_v16 }
  0xc9   : > { %1010 = vst [vmem:[%s4447_s24 + $0x110] sm:%s4742_s15] %v1009_v17  ;;  %v1013_v19 = vld [vmem:[%s4444_s22 + $0x214] sm:%s4742_s15] }
  0xca   : > { %1012 = vst [vmem:[%s4447_s24 + $0x120] sm:%s4742_s15] %v1011_v18  ;;  %1014 = vst [vmem:[%s4447_s24 + $0x130] sm:%s4742_s15] %v1013_v19 }
  0xcb   : > { %v1015_v20 = vld [vmem:[%s4444_s22 + $0x230] sm:%s4742_s15]  ;;  %v1019_v22 = vld [vmem:[%s4444_s22 + $0x268] sm:%s4742_s15] }
  0xcc   : > { %v1017_v21 = vld [vmem:[%s4444_s22 + $0x24c] sm:%s4742_s15]  ;;  %1016 = vst [vmem:[%s4447_s24 + $0x140] sm:%s4742_s15] %v1015_v20 }
  0xcd   : > { %1018 = vst [vmem:[%s4447_s24 + $0x150] sm:%s4742_s15] %v1017_v21  ;;  %v1021_v23 = vld [vmem:[%s4444_s22 + $0x284] sm:%s4742_s15] }
  0xce   : > { %1020 = vst [vmem:[%s4447_s24 + $0x160] sm:%s4742_s15] %v1019_v22  ;;  %1022 = vst [vmem:[%s4447_s24 + $0x170] sm:%s4742_s15] %v1021_v23 }
  0xcf   : > { %v1023_v24 = vld [vmem:[%s4444_s22 + $0x2a0] sm:%s4742_s15]  ;;  %v1027_v26 = vld [vmem:[%s4444_s22 + $0x2d8] sm:%s4742_s15] }
  0xd0   : > { %v1025_v25 = vld [vmem:[%s4444_s22 + $0x2bc] sm:%s4742_s15]  ;;  %1024 = vst [vmem:[%s4447_s24 + $0x180] sm:%s4742_s15] %v1023_v24 }
  0xd1   : > { %1026 = vst [vmem:[%s4447_s24 + $0x190] sm:%s4742_s15] %v1025_v25  ;;  %v1029_v27 = vld [vmem:[%s4444_s22 + $0x2f4] sm:%s4742_s15] }
  0xd2   : > { %1028 = vst [vmem:[%s4447_s24 + $0x1a0] sm:%s4742_s15] %v1027_v26  ;;  %1030 = vst [vmem:[%s4447_s24 + $0x1b0] sm:%s4742_s15] %v1029_v27 }
  0xd3   : > { %v1031_v28 = vld [vmem:[%s4444_s22 + $0x310] sm:%s4742_s15]  ;;  %v1035_v30 = vld [vmem:[%s4444_s22 + $0x348] sm:%s4742_s15] }
  0xd4   : > { %v1033_v29 = vld [vmem:[%s4444_s22 + $0x32c] sm:%s4742_s15]  ;;  %1032 = vst [vmem:[%s4447_s24 + $0x1c0] sm:%s4742_s15] %v1031_v28 }
  0xd5   : > { %1034 = vst [vmem:[%s4447_s24 + $0x1d0] sm:%s4742_s15] %v1033_v29  ;;  %v1037_v31 = vld [vmem:[%s4444_s22 + $0x364] sm:%s4742_s15] }
  0xd6   : > { %1036 = vst [vmem:[%s4447_s24 + $0x1e0] sm:%s4742_s15] %v1035_v30  ;;  %1038 = vst [vmem:[%s4447_s24 + $0x1f0] sm:%s4742_s15] %v1037_v31 }
  0xd7 PF: > { %p3064_p12 = scmp.ge.u32.totalorder %s4135_s29, 8 }
  0xd8   : > { %s4015_s23 = smov (!%p3064_p12), 1  }
  0xd9   : > { %399 = sbr.rel (%p3064_p12) target bundleno = 254 (0xfe), region = 72  ;;  %s400_s14 = sshll.u32 (!%p3064_p12), %s4015_s23, %s4135_s29 }
  0xda   : > { %s4874_s22 = sadd.s32 (!%p3064_p12), 4294967295, %s400_s14 }
  0xde   : > { %v410_v32 = vld [vmem:[%s4133_s27] sm:%s4874_s22]  ;;  %v414_v34 = vld [vmem:[%s4133_s27 + $0x38] sm:%s4874_s22] }
  0xdf   : > { %v412_v33 = vld [vmem:[%s4133_s27 + $0x1c] sm:%s4874_s22]  ;;  %411 = vst [vmem:[%s4137_s26] sm:%s4874_s22] %v410_v32 }
  0xe0   : > { %413 = vst [vmem:[%s4137_s26 + $0x10] sm:%s4874_s22] %v412_v33  ;;  %v416_v35 = vld [vmem:[%s4133_s27 + $0x54] sm:%s4874_s22] }
  0xe1   : > { %415 = vst [vmem:[%s4137_s26 + $0x20] sm:%s4874_s22] %v414_v34  ;;  %417 = vst [vmem:[%s4137_s26 + $0x30] sm:%s4874_s22] %v416_v35 }
  0xe2   : > { %v418_v36 = vld [vmem:[%s4133_s27 + $0x70] sm:%s4874_s22]  ;;  %v422_v38 = vld [vmem:[%s4133_s27 + $0xa8] sm:%s4874_s22] }
  0xe3   : > { %v420_v37 = vld [vmem:[%s4133_s27 + $0x8c] sm:%s4874_s22]  ;;  %419 = vst [vmem:[%s4137_s26 + $0x40] sm:%s4874_s22] %v418_v36 }
  0xe4   : > { %421 = vst [vmem:[%s4137_s26 + $0x50] sm:%s4874_s22] %v420_v37  ;;  %v424_v39 = vld [vmem:[%s4133_s27 + $0xc4] sm:%s4874_s22] }
  0xe5   : > { %423 = vst [vmem:[%s4137_s26 + $0x60] sm:%s4874_s22] %v422_v38  ;;  %425 = vst [vmem:[%s4137_s26 + $0x70] sm:%s4874_s22] %v424_v39 }
  0xe6   : > { %v426_v40 = vld [vmem:[%s4133_s27 + $0xe0] sm:%s4874_s22]  ;;  %v430_v42 = vld [vmem:[%s4133_s27 + $0x118] sm:%s4874_s22] }
  0xe7   : > { %v428_v41 = vld [vmem:[%s4133_s27 + $0xfc] sm:%s4874_s22]  ;;  %427 = vst [vmem:[%s4137_s26 + $0x80] sm:%s4874_s22] %v426_v40 }
  0xe8   : > { %429 = vst [vmem:[%s4137_s26 + $0x90] sm:%s4874_s22] %v428_v41  ;;  %v432_v43 = vld [vmem:[%s4133_s27 + $0x134] sm:%s4874_s22] }
  0xe9   : > { %431 = vst [vmem:[%s4137_s26 + $0xa0] sm:%s4874_s22] %v430_v42  ;;  %433 = vst [vmem:[%s4137_s26 + $0xb0] sm:%s4874_s22] %v432_v43 }
  0xea   : > { %v434_v44 = vld [vmem:[%s4133_s27 + $0x150] sm:%s4874_s22]  ;;  %v438_v46 = vld [vmem:[%s4133_s27 + $0x188] sm:%s4874_s22] }
  0xeb   : > { %v436_v45 = vld [vmem:[%s4133_s27 + $0x16c] sm:%s4874_s22]  ;;  %435 = vst [vmem:[%s4137_s26 + $0xc0] sm:%s4874_s22] %v434_v44 }
  0xec   : > { %437 = vst [vmem:[%s4137_s26 + $0xd0] sm:%s4874_s22] %v436_v45  ;;  %v440_v47 = vld [vmem:[%s4133_s27 + $0x1a4] sm:%s4874_s22] }
  0xed   : > { %439 = vst [vmem:[%s4137_s26 + $0xe0] sm:%s4874_s22] %v438_v46  ;;  %441 = vst [vmem:[%s4137_s26 + $0xf0] sm:%s4874_s22] %v440_v47 }
  0xee   : > { %v442_v48 = vld [vmem:[%s4133_s27 + $0x1c0] sm:%s4874_s22]  ;;  %v446_v50 = vld [vmem:[%s4133_s27 + $0x1f8] sm:%s4874_s22] }
  0xef   : > { %v444_v49 = vld [vmem:[%s4133_s27 + $0x1dc] sm:%s4874_s22]  ;;  %443 = vst [vmem:[%s4137_s26 + $0x100] sm:%s4874_s22] %v442_v48 }
  0xf0   : > { %445 = vst [vmem:[%s4137_s26 + $0x110] sm:%s4874_s22] %v444_v49  ;;  %v448_v51 = vld [vmem:[%s4133_s27 + $0x214] sm:%s4874_s22] }
  0xf1   : > { %447 = vst [vmem:[%s4137_s26 + $0x120] sm:%s4874_s22] %v446_v50  ;;  %449 = vst [vmem:[%s4137_s26 + $0x130] sm:%s4874_s22] %v448_v51 }
  0xf2   : > { %v450_v52 = vld [vmem:[%s4133_s27 + $0x230] sm:%s4874_s22]  ;;  %v454_v54 = vld [vmem:[%s4133_s27 + $0x268] sm:%s4874_s22] }
  0xf3   : > { %v452_v53 = vld [vmem:[%s4133_s27 + $0x24c] sm:%s4874_s22]  ;;  %451 = vst [vmem:[%s4137_s26 + $0x140] sm:%s4874_s22] %v450_v52 }
  0xf4   : > { %453 = vst [vmem:[%s4137_s26 + $0x150] sm:%s4874_s22] %v452_v53  ;;  %v456_v55 = vld [vmem:[%s4133_s27 + $0x284] sm:%s4874_s22] }
  0xf5   : > { %455 = vst [vmem:[%s4137_s26 + $0x160] sm:%s4874_s22] %v454_v54  ;;  %457 = vst [vmem:[%s4137_s26 + $0x170] sm:%s4874_s22] %v456_v55 }
  0xf6   : > { %v458_v56 = vld [vmem:[%s4133_s27 + $0x2a0] sm:%s4874_s22]  ;;  %v462_v58 = vld [vmem:[%s4133_s27 + $0x2d8] sm:%s4874_s22] }
  0xf7   : > { %v460_v57 = vld [vmem:[%s4133_s27 + $0x2bc] sm:%s4874_s22]  ;;  %459 = vst [vmem:[%s4137_s26 + $0x180] sm:%s4874_s22] %v458_v56 }
  0xf8   : > { %461 = vst [vmem:[%s4137_s26 + $0x190] sm:%s4874_s22] %v460_v57  ;;  %v464_v59 = vld [vmem:[%s4133_s27 + $0x2f4] sm:%s4874_s22] }
  0xf9   : > { %463 = vst [vmem:[%s4137_s26 + $0x1a0] sm:%s4874_s22] %v462_v58  ;;  %465 = vst [vmem:[%s4137_s26 + $0x1b0] sm:%s4874_s22] %v464_v59 }
  0xfa   : > { %v466_v60 = vld [vmem:[%s4133_s27 + $0x310] sm:%s4874_s22]  ;;  %v470_v62 = vld [vmem:[%s4133_s27 + $0x348] sm:%s4874_s22] }
  0xfb   : > { %v468_v61 = vld [vmem:[%s4133_s27 + $0x32c] sm:%s4874_s22]  ;;  %467 = vst [vmem:[%s4137_s26 + $0x1c0] sm:%s4874_s22] %v466_v60 }
  0xfc   : > { %469 = vst [vmem:[%s4137_s26 + $0x1d0] sm:%s4874_s22] %v468_v61  ;;  %v472_v63 = vld [vmem:[%s4133_s27 + $0x364] sm:%s4874_s22] }
  0xfd   : > { %471 = vst [vmem:[%s4137_s26 + $0x1e0] sm:%s4874_s22] %v470_v62  ;;  %473 = vst [vmem:[%s4137_s26 + $0x1f0] sm:%s4874_s22] %v472_v63 }
  0xfe PF: > { %p3066_p13 = scmp.ge.s32.totalorder %s3884_s25, 1  ;;  %p1059_p0 = scmp.lt.s32.totalorder %s3884_s25, 3 }
 0x100   : > { %p1060_p1 = pnand %p3066_p13, %p1059_p0 }
 0x101   : > { %s1066_s17 = sand.u32 (!%p1060_p1), 1, %s3868_s21   ;;  %s5681_s19 = sld [smem:[#allocation6_spill]] (!%p1060_p1) }
 0x102   : > { %1063 = sbr.rel (%p1060_p1) target bundleno = 1387 (0x56b), region = 130  ;;  %s3067_s26 = sshll.u32 (!%p1060_p1), %s1066_s17, 9 }
 0x103   : > { %s5111_s27 = scalar_lea.vmem (!%p1060_p1), [#allocation3], %s3067_s26  ;;  %s5682_s15 = sld [smem:[#allocation12_spill]] (!%p1060_p1) }
 0x104   : > { %s3068_s14 = sshll.u32 (!%p1060_p1), %s1066_s17, 7 }
 0x105   : > { %s5257_s21 = scalar_lea.vmem (!%p1060_p1), [#allocation4], %s3068_s14  }
 0x107   : > { %v3552_v0 = vld [vmem:[%s5632_s1 + $0x8] sm:$0xff]   ;;  %v3553_v1 = vld [vmem:[%s5632_s1] sm:$0xff]   ;;  %vm1169_vm0 = vcmask 261120   ;;  %v1149_v4 = vld [vmem:[%s5631_s0 + $0x10] sm:$0xff]  ;;  %vm1227_vm1 = vcmask 523264   ;;  %s5244_s20 = sshll.u32 %s5681_s19, 2 }
 0x108   : > { %3231 = vmatprep.subr.bf16.mxu1 %v3552_v0  ;;  %v1147_v2 = vld [vmem:[%s5631_s0] sm:$0xff]  ;;  %v1148_v3 = vld [vmem:[%s5631_s0 + $0x8] sm:$0xff]  ;;  %v1150_v6 = vld [vmem:[%s5631_s0 + $0x18] sm:$0xff]  ;;  %p1127_p2 = scmp.lt.s32.totalorder %s5244_s20, 6  ;;  %s5684_s29 = sld [smem:[#allocation6_spill]] (%p4119_p6) }
 0x109   : > { %3232 = vmatpush3.bf16.msra.mxu1 %v3552_v0  ;;  %v1151_v5 = vpack.c.bf16 %v1148_v3, %v1147_v2  ;;  %v1152_v7 = vpack.c.bf16 %v1150_v6, %v1149_v4  ;;  %v3554_v8 = vld [vmem:[%s5635_s4 + $0x18] sm:$0xff]   ;;  %v3555_v9 = vld [vmem:[%s5635_s4 + $0x10] sm:$0xff]   ;;  %v3556_v10 = vld [vmem:[%s5635_s4 + $0x8] sm:$0xff]   ;;  %s2359_s24 = ssub.s32 (%p4119_p6), 7, %s5244_s20 }
 0x10a   : > { %3233 = vmatprep.subr.bf16.mxu1 %v3553_v1  ;;  %v3557_v11 = vld [vmem:[%s5635_s4] sm:$0xff]   ;;  %s1128_s16 = scalar_select %p1127_p2, %s5244_s20, 6 }
 0x10b   : > { %3235 = vmatprep.mubr.msk.bf16.mxu1 %vm1169_vm0, %v1151_v5  ;;  %v3074_v57 = vld [vmem:[%s5633_s2] ss:$0 sm:$0xff]  ;;  %p2360_p3 = scmp.lt.s32.totalorder (%p4119_p6), %s2359_s24, 4 }
 0x10c   : > { %v3075_v62 = vld [vmem:[%s5634_s3] ss:$0 sm:$0xff]  ;;  %s1129_s23 = scalar_lea.vmem %s5682_s15, %s1128_s16 }
 0x10d   : > { %3234 = vmatpush3.bf16.msra.mxu1 %v3553_v1 }
 0x10e   : > { %3239 = vmatprep.subr.bf16.mxu1 %v3554_v8  ;;  %s3212_s28 = sshll.u32 (%p4119_p6), %s5684_s29, 5 }
 0x110   : > { %3236 = vmatmul.mubr.msk.bf16.vlgmr.msra.gmra.mxu1 %vm1169_vm0, %v1152_v7 }
 0x111   : > { %3240 = vmatpush3.bf16.msra.mxu1 %v3554_v8 }
 0x112   : > { %3241 = vmatprep.subr.bf16.mxu1 %v3555_v9 }
 0x115   : > { %3242 = vmatpush3.bf16.msra.mxu1 %v3555_v9 }
 0x116   : > { %3243 = vmatprep.subr.bf16.mxu1 %v3556_v10 }
 0x119   : > { %3244 = vmatpush3.bf16.msra.mxu1 %v3556_v10 }
 0x11a   : > { %3245 = vmatprep.subr.bf16.mxu1 %v3557_v11 }
 0x11d   : > { %3246 = vmatpush3.bf16.msra.mxu1 %v3557_v11 }
 0x1d0   : > { %v3237_v12 = vpop.f32.mrf.mxu1 }
 0x1d1   : > { %v1243_v17 = vmul.f32 %v3237_v12, %v3237_v12  ;;  %v1231_v22 = vsel %vm1227_vm1, %v3237_v12, 0.0 }
 0x1d2   : > { %v1210_v13 = vpop.f32.mrf.mxu1 }
 0x1d3   : > { %v1241_v15 = vmul.f32 %v1210_v13, %v1210_v13  ;;  %v1228_v18 = vsel %vm1227_vm1, %v1210_v13, 0.0  ;;  %v1248_v28 = vsel %vm1227_vm1, %v1243_v17, 0.0  ;;  %v3558_v17 = vld [vmem:[%s5638_s7 + $0x74] ss:$8 sps:$4 sm:$0xff]  }
 0x1d4   : > { %v3238_v14 = vpop.f32.mrf.mxu1  ;;  %1563 = vmatprep.subr.bf16.mxu0 %v3558_v17 }
 0x1d5   : > { %v1245_v23 = vsel %vm1227_vm1, %v1241_v15, 0.0  ;;  %v1244_v24 = vmul.f32 %v3238_v14, %v3238_v14  ;;  %v1233_v29 = vsel %vm1227_vm1, %v3238_v14, 0.0 }
 0x1d6   : > { %v1213_v16 = vpop.f32.mrf.mxu1 }
 0x1d7   : > { %v1229_v19 = vsel %vm1227_vm1, %v1213_v16, 0.0  ;;  %v1242_v20 = vmul.f32 %v1213_v16, %v1213_v16  ;;  %v1250_v32 = vsel %vm1227_vm1, %v1244_v24, 0.0  ;;  %v3569_v24 = vld [vmem:[%s5638_s7 + $0x40] ss:$8 sps:$4 sm:$0xff]  }
 0x1d8   : > { %v1230_v21 = vadd.f32 %v1229_v19, %v1228_v18  ;;  %v3560_v18 = vld [vmem:[%s5638_s7 + $0x70] ss:$8 sps:$4 sm:$0xff]   ;;  %v3561_v19 = vld [vmem:[%s5638_s7 + $0x64] ss:$8 sps:$4 sm:$0xff]  }
 0x1d9   : > { %v1246_v25 = vsel %vm1227_vm1, %v1242_v20, 0.0  ;;  %1564 = vmatpush1.bf16.msra.mxu0 %v3560_v18  ;;  %v3563_v20 = vld [vmem:[%s5638_s7 + $0x60] ss:$8 sps:$4 sm:$0xff]  }
 0x1da   : > { %v1232_v26 = vadd.f32 %v1231_v22, %v1230_v21  ;;  %v1247_v27 = vadd.f32 %v1246_v25, %v1245_v23  ;;  %1565 = vmatprep.subr.bf16.mxu0 %v3561_v19  ;;  %v3564_v21 = vld [vmem:[%s5638_s7 + $0x54] ss:$8 sps:$4 sm:$0xff]   ;;  %v3566_v22 = vld [vmem:[%s5638_s7 + $0x50] ss:$8 sps:$4 sm:$0xff]   ;;  %v3567_v23 = vld [vmem:[%s5638_s7 + $0x44] ss:$8 sps:$4 sm:$0xff]  }
 0x1db   : > { %v3570_v25 = vld [vmem:[%s5638_s7 + $0x34] ss:$8 sps:$4 sm:$0xff]  }
 0x1dc   : > { %v1234_v30 = vadd.f32 %v1233_v29, %v1232_v26  ;;  %v1249_v31 = vadd.f32 %v1248_v28, %v1247_v27  ;;  %v3572_v26 = vld [vmem:[%s5638_s7 + $0x30] ss:$8 sps:$4 sm:$0xff]   ;;  %v3573_v27 = vld [vmem:[%s5638_s7 + $0x24] ss:$8 sps:$4 sm:$0xff]   ;;  %v3575_v28 = vld [vmem:[%s5638_s7 + $0x20] ss:$8 sps:$4 sm:$0xff]  }
 0x1dd   : > { %1566 = vmatpush1.bf16.msra.mxu0 %v3563_v20  ;;  %v3576_v29 = vld [vmem:[%s5638_s7 + $0x14] ss:$8 sps:$4 sm:$0xff]  }
 0x1de   : > { %v1235_v33 = vrot.slane %v1234_v30, 4  ;;  %v1251_v34 = vadd.f32 %v1250_v32, %v1249_v31  ;;  %1567 = vmatprep.subr.bf16.mxu0 %v3564_v21  ;;  %v3579_v31 = vld [vmem:[%s5638_s7 + $0x4] ss:$8 sps:$4 sm:$0xff]   ;;  %v4016_v32 = vmov 0  }
 0x1df   : > { %1595 = vmatprep.mubr.bf16.mxu0 %v4016_v32 }
 0x1e0   : > { %v1236_v35 = vadd.f32 %v1235_v33, %v1234_v30  ;;  %v1252_v36 = vrot.slane %v1251_v34, 4  ;;  %v3578_v30 = vld [vmem:[%s5638_s7 + $0x10] ss:$8 sps:$4 sm:$0xff]   ;;  %v3581_v33 = vld [vmem:[%s5638_s7] ss:$8 sps:$4 sm:$0xff]  }
 0x1e1   : > { %1568 = vmatpush1.bf16.msra.mxu0 %v3566_v22 }
 0x1e2   : > { %v1237_v37 = vrot.slane %v1236_v35, 2  ;;  %v1253_v38 = vadd.f32 %v1252_v36, %v1251_v34  ;;  %1569 = vmatprep.subr.bf16.mxu0 %v3567_v23 }
 0x1e4   : > { %v1238_v39 = vadd.f32 %v1237_v37, %v1236_v35  ;;  %v1254_v40 = vrot.slane %v1253_v38, 2 }
 0x1e5   : > { %1570 = vmatpush1.bf16.msra.mxu0 %v3569_v24 }
 0x1e6   : > { %v1239_v41 = vrot.slane %v1238_v39, 1  ;;  %v1255_v42 = vadd.f32 %v1254_v40, %v1253_v38  ;;  %1571 = vmatprep.subr.bf16.mxu0 %v3570_v25 }
 0x1e8   : > { %v1240_v43 = vadd.f32 %v1239_v41, %v1238_v39  ;;  %v1256_v44 = vrot.slane %v1255_v42, 1 }
 0x1e9   : > { %1572 = vmatpush1.bf16.msra.mxu0 %v3572_v26 }
 0x1ea   : > { %v1257_v45 = vadd.f32 %v1256_v44, %v1255_v42  ;;  %v1258_v46 = vmul.f32 0.03125, %v1240_v43  ;;  %1573 = vmatprep.subr.bf16.mxu0 %v3573_v27 }
 0x1ec   : > { %v1259_v47 = vmul.f32 0.03125, %v1257_v45  ;;  %v1260_v48 = vmul.f32 %v1258_v46, %v1258_v46  ;;  %v1264_v52 = vsub.f32 %v1213_v16, %v1258_v46  ;;  %v1265_v53 = vsub.f32 %v3237_v12, %v1258_v46 }
 0x1ed   : > { %v1266_v54 = vsub.f32 %v3238_v14, %v1258_v46  ;;  %v1263_v55 = vsub.f32 %v1210_v13, %v1258_v46  ;;  %1574 = vmatpush1.bf16.msra.mxu0 %v3575_v28 }
 0x1ee   : > { %v1261_v49 = vsub.f32 %v1259_v47, %v1260_v48  ;;  %1575 = vmatprep.subr.bf16.mxu0 %v3576_v29 }
 0x1f0   : > { %v1262_v50 = vmax.f32 %v1261_v49, 0.0 }
 0x1f1   : > { %1576 = vmatpush1.bf16.msra.mxu0 %v3578_v30 }
 0x1f2   : > { %v1267_v51 = vadd.f32 1e-05, %v1262_v50  ;;  %1577 = vmatprep.subr.bf16.mxu0 %v3579_v31  ;;  %v3584_v31 = vld [vmem:[%s5111_s27 + $0xe4] ss:$16 sps:$4 sm:$0xff]  }
 0x1f3   : > { %2212 = vmatprep.subr.bf16.mxu1 %v3584_v31 }
 0x1f4   : > { %3678 = vrsqrt.f32 %v1267_v51 }
 0x1f5   : > { %1578 = vmatpush1.bf16.msra.mxu0 %v3581_v33  ;;  %v3585_v33 = vld [vmem:[%s5111_s27 + $0xe8] ss:$16 sps:$4 sm:$0xff]  }
 0x201   : > { %v3679_v56 = vpop.eup %3678 }
 0x202   : > { %v1270_v58 = vmul.f32 %v3679_v56, %v1264_v52  ;;  %v1271_v59 = vmul.f32 %v3679_v56, %v1265_v53  ;;  %v1272_v60 = vmul.f32 %v3679_v56, %v1266_v54  ;;  %v1269_v61 = vmul.f32 %v3679_v56, %v1263_v55 }
 0x204   : > { %v1280_v63 = vmul.f32 %v3074_v57, %v1270_v58  ;;  %v1281_v0 = vmul.f32 %v3074_v57, %v1271_v59  ;;  %v1282_v1 = vmul.f32 %v3074_v57, %v1272_v60  ;;  %v1279_v2 = vmul.f32 %v3074_v57, %v1269_v61 }
 0x206   : > { %v1290_v3 = vadd.f32 %v3075_v62, %v1280_v63  ;;  %v1289_v4 = vadd.f32 %v3075_v62, %v1279_v2  ;;  %v1291_v5 = vadd.f32 %v3075_v62, %v1281_v0  ;;  %v1292_v6 = vadd.f32 %v3075_v62, %v1282_v1 }
 0x208   : > { %vm1293_vm2 = vcmp.gt.f32.partialorder %v1289_v4, 0.0  ;;  %vm1294_vm3 = vcmp.gt.f32.partialorder %v1290_v3, 0.0  ;;  %v1297_v7 = vmul.f32 0.2, %v1289_v4  ;;  %v1298_v8 = vmul.f32 0.2, %v1290_v3 }
 0x209   : > { %vm1295_vm4 = vcmp.gt.f32.partialorder %v1291_v5, 0.0  ;;  %vm1296_vm5 = vcmp.gt.f32.partialorder %v1292_v6, 0.0  ;;  %v1299_v9 = vmul.f32 0.2, %v1291_v5  ;;  %v1300_v10 = vmul.f32 0.2, %v1292_v6 }
 0x20a   : > { %v1301_v11 = vsel %vm1293_vm2, %v1289_v4, %v1297_v7  ;;  %v1302_v12 = vsel %vm1294_vm3, %v1290_v3, %v1298_v8  ;;  %v3082_v7 = vld [vmem:[%s5636_s5] ss:$0 sm:$0xff] }
 0x20b   : > { %v1305_v13 = vpack.c.bf16 %v1302_v12, %v1301_v11  ;;  %v1303_v14 = vsel %vm1295_vm4, %v1291_v5, %v1299_v9  ;;  %v1304_v15 = vsel %vm1296_vm5, %v1292_v6, %v1300_v10  ;;  %v3083_v12 = vld [vmem:[%s5637_s6] ss:$0 sm:$0xff] }
 0x20c   : > { %v1306_v16 = vpack.c.bf16 %v1304_v15, %v1303_v14 }
 0x20d   : > { %3247 = vmatprep.mubr.msk.bf16.mxu1 %vm1227_vm1, %v1305_v13 }
 0x20e   : > { %3248 = vmatmul.mubr.msk.bf16.vlgmr.msra.gmra.mxu1 %vm1227_vm1, %v1306_v16 }
 0x2ce   : > { %v3249_v34 = vpop.f32.mrf.mxu1 }
 0x2cf   : > { %v1407_v41 = vmul.f32 %v3249_v34, %v3249_v34 }
 0x2d0   : > { %v1379_v35 = vpop.f32.mrf.mxu1 }
 0x2d1   : > { %v1405_v38 = vmul.f32 %v1379_v35, %v1379_v35 }
 0x2d2   : > { %v3250_v36 = vpop.f32.mrf.mxu1 }
 0x2d3   : > { %v1408_v44 = vmul.f32 %v3250_v36, %v3250_v36 }
 0x2d4   : > { %v1382_v37 = vpop.f32.mrf.mxu1 }
 0x2d5   : > { %v1396_v39 = vadd.f32 %v1382_v37, %v1379_v35  ;;  %v1406_v40 = vmul.f32 %v1382_v37, %v1382_v37 }
 0x2d7   : > { %v1397_v42 = vadd.f32 %v3249_v34, %v1396_v39  ;;  %v1409_v43 = vadd.f32 %v1406_v40, %v1405_v38  ;;  %v3591_v38 = vld [vmem:[%s5111_s27 + $0xc8] ss:$16 sps:$4 sm:$0xff]   ;;  %v3596_v39 = vld [vmem:[%s5111_s27 + $0xa4] ss:$16 sps:$4 sm:$0xff]   ;;  %v3599_v40 = vld [vmem:[%s5111_s27 + $0xac] ss:$16 sps:$4 sm:$0xff]  }
 0x2d9   : > { %v1398_v45 = vadd.f32 %v3250_v36, %v1397_v42  ;;  %v1410_v46 = vadd.f32 %v1409_v43, %v1407_v41  ;;  %v3594_v41 = vld [vmem:[%s5111_s27 + $0xa0] ss:$16 sps:$4 sm:$0xff]   ;;  %v3597_v42 = vld [vmem:[%s5111_s27 + $0xa8] ss:$16 sps:$4 sm:$0xff]   ;;  %v3602_v43 = vld [vmem:[%s5111_s27 + $0x84] ss:$16 sps:$4 sm:$0xff]  }
 0x2db   : > { %v1399_v47 = vrot.slane %v1398_v45, 4  ;;  %v1411_v48 = vadd.f32 %v1410_v46, %v1408_v44  ;;  %v3605_v44 = vld [vmem:[%s5111_s27 + $0x8c] ss:$16 sps:$4 sm:$0xff]   ;;  %v3603_v46 = vld [vmem:[%s5111_s27 + $0x88] ss:$16 sps:$4 sm:$0xff]  }
 0x2dd   : > { %v1400_v49 = vadd.f32 %v1399_v47, %v1398_v45  ;;  %v1412_v50 = vrot.slane %v1411_v48, 4  ;;  %v3600_v45 = vld [vmem:[%s5111_s27 + $0x80] ss:$16 sps:$4 sm:$0xff]   ;;  %v3608_v47 = vld [vmem:[%s5111_s27 + $0x64] ss:$16 sps:$4 sm:$0xff]  }
 0x2df   : > { %v1401_v51 = vrot.slane %v1400_v49, 2  ;;  %v1413_v52 = vadd.f32 %v1412_v50, %v1411_v48  ;;  %v3611_v48 = vld [vmem:[%s5111_s27 + $0x6c] ss:$16 sps:$4 sm:$0xff]   ;;  %v3609_v50 = vld [vmem:[%s5111_s27 + $0x68] ss:$16 sps:$4 sm:$0xff]  }
 0x2e1   : > { %v1402_v53 = vadd.f32 %v1401_v51, %v1400_v49  ;;  %v1414_v54 = vrot.slane %v1413_v52, 2  ;;  %v3606_v49 = vld [vmem:[%s5111_s27 + $0x60] ss:$16 sps:$4 sm:$0xff]   ;;  %v3614_v51 = vld [vmem:[%s5111_s27 + $0x44] ss:$16 sps:$4 sm:$0xff]  }
 0x2e3   : > { %v1403_v55 = vrot.slane %v1402_v53, 1  ;;  %v1415_v56 = vadd.f32 %v1414_v54, %v1413_v52  ;;  %v3617_v52 = vld [vmem:[%s5111_s27 + $0x4c] ss:$16 sps:$4 sm:$0xff]   ;;  %v3615_v54 = vld [vmem:[%s5111_s27 + $0x48] ss:$16 sps:$4 sm:$0xff]  }
 0x2e5   : > { %v1404_v57 = vadd.f32 %v1403_v55, %v1402_v53  ;;  %v1416_v58 = vrot.slane %v1415_v56, 1  ;;  %v3612_v53 = vld [vmem:[%s5111_s27 + $0x40] ss:$16 sps:$4 sm:$0xff]   ;;  %v3620_v55 = vld [vmem:[%s5111_s27 + $0x24] ss:$16 sps:$4 sm:$0xff]  }
 0x2e7   : > { %v1417_v59 = vadd.f32 %v1416_v58, %v1415_v56  ;;  %v1418_v60 = vmul.f32 0.03125, %v1404_v57  ;;  %v3623_v56 = vld [vmem:[%s5111_s27 + $0x2c] ss:$16 sps:$4 sm:$0xff]   ;;  %v3618_v57 = vld [vmem:[%s5111_s27 + $0x20] ss:$16 sps:$4 sm:$0xff]  }
 0x2e8   : > { %v3621_v58 = vld [vmem:[%s5111_s27 + $0x28] ss:$16 sps:$4 sm:$0xff]  }
 0x2e9   : > { %v1419_v61 = vmul.f32 0.03125, %v1417_v59  ;;  %v1420_v62 = vmul.f32 %v1418_v60, %v1418_v60  ;;  %v1424_v2 = vsub.f32 %v1382_v37, %v1418_v60  ;;  %v1423_v3 = vsub.f32 %v1379_v35, %v1418_v60  ;;  %v3590_v35 = vld [vmem:[%s5111_s27 + $0xc4] ss:$16 sps:$4 sm:$0xff]   ;;  %v3588_v37 = vld [vmem:[%s5111_s27 + $0xc0] ss:$16 sps:$4 sm:$0xff]  }
 0x2ea   : > { %v1425_v4 = vsub.f32 %v3249_v34, %v1418_v60  ;;  %v1426_v5 = vsub.f32 %v3250_v36, %v1418_v60  ;;  %v3587_v34 = vld [vmem:[%s5111_s27 + $0xec] ss:$16 sps:$4 sm:$0xff]   ;;  %v3626_v59 = vld [vmem:[%s5111_s27 + $0x4] ss:$16 sps:$4 sm:$0xff]  }
 0x2eb   : > { %v1421_v63 = vsub.f32 %v1419_v61, %v1420_v62  ;;  %2265 = vmatprep.subr.bf16.mxu0 %v3587_v34  ;;  %v3593_v36 = vld [vmem:[%s5111_s27 + $0xcc] ss:$16 sps:$4 sm:$0xff]   ;;  %v3624_v61 = vld [vmem:[%s5111_s27] ss:$16 sps:$4 sm:$0xff]   ;;  %v3627_v62 = vld [vmem:[%s5111_s27 + $0x8] ss:$16 sps:$4 sm:$0xff]  }
 0x2ec   : > { %v3629_v60 = vld [vmem:[%s5111_s27 + $0xc] ss:$16 sps:$4 sm:$0xff]  }
 0x2ed   : > { %v1422_v0 = vmax.f32 %v1421_v63, 0.0  ;;  %v3632_v63 = vld [vmem:[%s5111_s27 + $0x1e4] ss:$16 sps:$4 sm:$0xff]  }
 0x2ef   : > { %v1427_v1 = vadd.f32 1e-05, %v1422_v0  ;;  %v3635_v0 = vld [vmem:[%s5111_s27 + $0x1ec] ss:$16 sps:$4 sm:$0xff]  }
 0x2f1   : > { %3680 = vrsqrt.f32 %v1427_v1  ;;  %v3630_v1 = vld [vmem:[%s5111_s27 + $0x1e0] ss:$16 sps:$4 sm:$0xff]  }
 0x2fe   : > { %v3681_v6 = vpop.eup %3680 }
 0x2ff   : > { %v1430_v8 = vmul.f32 %v3681_v6, %v1424_v2  ;;  %v1429_v9 = vmul.f32 %v3681_v6, %v1423_v3  ;;  %v1431_v10 = vmul.f32 %v3681_v6, %v1425_v4  ;;  %v1432_v11 = vmul.f32 %v3681_v6, %v1426_v5  ;;  %v3633_v2 = vld [vmem:[%s5111_s27 + $0x1e8] ss:$16 sps:$4 sm:$0xff]   ;;  %v3638_v3 = vld [vmem:[%s5111_s27 + $0x1c4] ss:$16 sps:$4 sm:$0xff]   ;;  %v3641_v4 = vld [vmem:[%s5111_s27 + $0x1cc] ss:$16 sps:$4 sm:$0xff]  }
 0x300   : > { %v3636_v5 = vld [vmem:[%s5111_s27 + $0x1c0] ss:$16 sps:$4 sm:$0xff]   ;;  %v3639_v6 = vld [vmem:[%s5111_s27 + $0x1c8] ss:$16 sps:$4 sm:$0xff]  }
 0x301   : > { %v1440_v13 = vmul.f32 %v3082_v7, %v1430_v8  ;;  %v1439_v14 = vmul.f32 %v3082_v7, %v1429_v9  ;;  %v1441_v15 = vmul.f32 %v3082_v7, %v1431_v10  ;;  %v1442_v16 = vmul.f32 %v3082_v7, %v1432_v11  ;;  %v3644_v7 = vld [vmem:[%s5111_s27 + $0x1a4] ss:$16 sps:$4 sm:$0xff]   ;;  %v3647_v8 = vld [vmem:[%s5111_s27 + $0x1ac] ss:$16 sps:$4 sm:$0xff]   ;;  %v3642_v9 = vld [vmem:[%s5111_s27 + $0x1a0] ss:$16 sps:$4 sm:$0xff]  }
 0x302   : > { %v3645_v10 = vld [vmem:[%s5111_s27 + $0x1a8] ss:$16 sps:$4 sm:$0xff]   ;;  %v3650_v11 = vld [vmem:[%s5111_s27 + $0x184] ss:$16 sps:$4 sm:$0xff]  }
 0x303   : > { %v1449_v17 = vadd.f32 %v3083_v12, %v1439_v14  ;;  %v1450_v18 = vadd.f32 %v3083_v12, %v1440_v13  ;;  %v1451_v19 = vadd.f32 %v3083_v12, %v1441_v15  ;;  %v1452_v20 = vadd.f32 %v3083_v12, %v1442_v16  ;;  %v3653_v12 = vld [vmem:[%s5111_s27 + $0x18c] ss:$16 sps:$4 sm:$0xff]   ;;  %v3648_v13 = vld [vmem:[%s5111_s27 + $0x180] ss:$16 sps:$4 sm:$0xff]   ;;  %v3651_v14 = vld [vmem:[%s5111_s27 + $0x188] ss:$16 sps:$4 sm:$0xff]  }
 0x304   : > { %v3656_v15 = vld [vmem:[%s5111_s27 + $0x164] ss:$16 sps:$4 sm:$0xff]   ;;  %v3659_v16 = vld [vmem:[%s5111_s27 + $0x16c] ss:$16 sps:$4 sm:$0xff]  }
 0x305   : > { %vm1453_vm6 = vcmp.gt.f32.partialorder %v1449_v17, 0.0  ;;  %vm1454_vm7 = vcmp.gt.f32.partialorder %v1450_v18, 0.0  ;;  %v1457_v21 = vmul.f32 0.2, %v1449_v17  ;;  %v1458_v22 = vmul.f32 0.2, %v1450_v18 }
 0x306   : > { %v1459_v26 = vmul.f32 0.2, %v1451_v19  ;;  %v1460_v27 = vmul.f32 0.2, %v1452_v20  ;;  %vm1455_vm8 = vcmp.gt.f32.partialorder %v1451_v19, 0.0  ;;  %vm1456_vm9 = vcmp.gt.f32.partialorder %v1452_v20, 0.0 }
 0x307   : > { %v1461_v23 = vsel %vm1453_vm6, %v1449_v17, %v1457_v21  ;;  %v1462_v24 = vsel %vm1454_vm7, %v1450_v18, %v1458_v22  ;;  %v3654_v17 = vld [vmem:[%s5111_s27 + $0x160] ss:$16 sps:$4 sm:$0xff]   ;;  %v3657_v18 = vld [vmem:[%s5111_s27 + $0x168] ss:$16 sps:$4 sm:$0xff]  }
 0x308   : > { %v1465_v25 = vpack.c.bf16 %v1462_v24, %v1461_v23  ;;  %v1463_v28 = vsel %vm1455_vm8, %v1451_v19, %v1459_v26  ;;  %v1464_v29 = vsel %vm1456_vm9, %v1452_v20, %v1460_v27  ;;  %v3662_v19 = vld [vmem:[%s5111_s27 + $0x144] ss:$16 sps:$4 sm:$0xff]   ;;  %v3665_v20 = vld [vmem:[%s5111_s27 + $0x14c] ss:$16 sps:$4 sm:$0xff]   ;;  %v3660_v21 = vld [vmem:[%s5111_s27 + $0x140] ss:$16 sps:$4 sm:$0xff]  }
 0x309   : > { %v1466_v30 = vpack.c.bf16 %v1464_v29, %v1463_v28  ;;  %v3663_v22 = vld [vmem:[%s5111_s27 + $0x148] ss:$16 sps:$4 sm:$0xff]   ;;  %v3666_v23 = vld [vmem:[%s5111_s27 + $0x120] ss:$16 sps:$4 sm:$0xff]   ;;  %v3668_v24 = vld [vmem:[%s5111_s27 + $0x124] ss:$16 sps:$4 sm:$0xff]  }
 0x30a   : > { %1596 = vmatmul.mubr.bf16.vlgmr.msra.gmra.mxu0 %v1465_v25  ;;  %v3669_v25 = vld [vmem:[%s5111_s27 + $0x128] ss:$16 sps:$4 sm:$0xff]   ;;  %v3671_v26 = vld [vmem:[%s5111_s27 + $0x12c] ss:$16 sps:$4 sm:$0xff]   ;;  %v3674_v27 = vld [vmem:[%s5111_s27 + $0x104] ss:$16 sps:$4 sm:$0xff]  }
 0x30b   : > { %1605 = vmatprep.mubr.bf16.mxu0 %v4016_v32  ;;  %v3582_v32 = vld [vmem:[%s5111_s27 + $0xe0] ss:$16 sps:$4 sm:$0xff]   ;;  %2266 = vmatpush1.bf16.msra.mxu0 %v3585_v33  ;;  %v3677_v28 = vld [vmem:[%s5111_s27 + $0x10c] ss:$16 sps:$4 sm:$0xff]  }
 0x30c   : > { %2213 = vmatpush1.bf16.msra.mxu1 %v3582_v32  ;;  %2267 = vmatprep.subr.bf16.mxu0 %v3593_v36  ;;  %v3672_v29 = vld [vmem:[%s5111_s27 + $0x100] ss:$16 sps:$4 sm:$0xff]  }
 0x30d   : > { %2214 = vmatprep.subr.bf16.mxu1 %v3590_v35 }
 0x30f   : > { %2268 = vmatpush1.bf16.msra.mxu0 %v3591_v38 }
 0x310   : > { %2215 = vmatpush1.bf16.msra.mxu1 %v3588_v37  ;;  %2269 = vmatprep.subr.bf16.mxu0 %v3599_v40 }
 0x311   : > { %2216 = vmatprep.subr.bf16.mxu1 %v3596_v39 }
 0x312   : > { %1606 = vmatmul.mubr.bf16.gmra.mxu0 %v1466_v30  ;;  %v3675_v30 = vld [vmem:[%s5111_s27 + $0x108] ss:$16 sps:$4 sm:$0xff]   ;;  %s5685_s27 = sld [smem:[#allocation13_spill]] (%p4119_p6) }
 0x313   : > { %2270 = vmatpush1.bf16.msra.mxu0 %v3597_v42 }
 0x314   : > { %2217 = vmatpush1.bf16.msra.mxu1 %v3594_v41  ;;  %2271 = vmatprep.subr.bf16.mxu0 %v3605_v44 }
 0x315   : > { %2218 = vmatprep.subr.bf16.mxu1 %v3602_v43 }
 0x317   : > { %2272 = vmatpush1.bf16.msra.mxu0 %v3603_v46 }
 0x318   : > { %2219 = vmatpush1.bf16.msra.mxu1 %v3600_v45  ;;  %2273 = vmatprep.subr.bf16.mxu0 %v3611_v48  ;;  %s5282_s30 = scalar_lea.vmem (%p4119_p6), %s5685_s27, %s3212_s28  }
 0x319   : > { %2220 = vmatprep.subr.bf16.mxu1 %v3608_v47 }
 0x31b   : > { %2274 = vmatpush1.bf16.msra.mxu0 %v3609_v50 }
 0x31c   : > { %2221 = vmatpush1.bf16.msra.mxu1 %v3606_v49  ;;  %2275 = vmatprep.subr.bf16.mxu0 %v3617_v52 }
 0x31d   : > { %2222 = vmatprep.subr.bf16.mxu1 %v3614_v51 }
 0x31f   : > { %2276 = vmatpush1.bf16.msra.mxu0 %v3615_v54 }
 0x320   : > { %2223 = vmatpush1.bf16.msra.mxu1 %v3612_v53  ;;  %2277 = vmatprep.subr.bf16.mxu0 %v3623_v56 }
 0x321   : > { %2224 = vmatprep.subr.bf16.mxu1 %v3620_v55 }
 0x323   : > { %2278 = vmatpush1.bf16.msra.mxu0 %v3621_v58 }
 0x324   : > { %2225 = vmatpush1.bf16.msra.mxu1 %v3618_v57  ;;  %2279 = vmatprep.subr.bf16.mxu0 %v3629_v60 }
 0x325   : > { %2226 = vmatprep.subr.bf16.mxu1 %v3626_v59 }
 0x327   : > { %2280 = vmatpush1.bf16.msra.mxu0 %v3627_v62 }
 0x328   : > { %2227 = vmatpush1.bf16.msra.mxu1 %v3624_v61  ;;  %2281 = vmatprep.subr.bf16.mxu0 %v3635_v0 }
 0x329   : > { %2228 = vmatprep.subr.bf16.mxu1 %v3632_v63 }
 0x32b   : > { %2282 = vmatpush2.bf16.msra.mxu0 %v3633_v2 }
 0x32c   : > { %2229 = vmatpush2.bf16.msra.mxu1 %v3630_v1  ;;  %2283 = vmatprep.subr.bf16.mxu0 %v3641_v4 }
 0x32d   : > { %2230 = vmatprep.subr.bf16.mxu1 %v3638_v3 }
 0x32f   : > { %2284 = vmatpush2.bf16.msra.mxu0 %v3639_v6 }
 0x330   : > { %2231 = vmatpush2.bf16.msra.mxu1 %v3636_v5  ;;  %2285 = vmatprep.subr.bf16.mxu0 %v3647_v8 }
 0x331   : > { %2232 = vmatprep.subr.bf16.mxu1 %v3644_v7 }
 0x333   : > { %2286 = vmatpush2.bf16.msra.mxu0 %v3645_v10 }
 0x334   : > { %2233 = vmatpush2.bf16.msra.mxu1 %v3642_v9  ;;  %2287 = vmatprep.subr.bf16.mxu0 %v3653_v12 }
 0x335   : > { %2234 = vmatprep.subr.bf16.mxu1 %v3650_v11 }
 0x337   : > { %2288 = vmatpush2.bf16.msra.mxu0 %v3651_v14 }
 0x338   : > { %2235 = vmatpush2.bf16.msra.mxu1 %v3648_v13  ;;  %2289 = vmatprep.subr.bf16.mxu0 %v3659_v16 }
 0x339   : > { %2236 = vmatprep.subr.bf16.mxu1 %v3656_v15 }
 0x33b   : > { %2290 = vmatpush2.bf16.msra.mxu0 %v3657_v18 }
 0x33c   : > { %2237 = vmatpush2.bf16.msra.mxu1 %v3654_v17  ;;  %2291 = vmatprep.subr.bf16.mxu0 %v3665_v20 }
 0x33d   : > { %2238 = vmatprep.subr.bf16.mxu1 %v3662_v19 }
 0x33f   : > { %2292 = vmatpush2.bf16.msra.mxu0 %v3663_v22 }
 0x340   : > { %2239 = vmatpush2.bf16.msra.mxu1 %v3660_v21  ;;  %2293 = vmatprep.subr.bf16.mxu0 %v3671_v26 }
 0x341   : > { %2240 = vmatprep.subr.bf16.mxu1 %v3668_v24 }
 0x343   : > { %2294 = vmatpush2.bf16.msra.mxu0 %v3669_v25 }
 0x344   : > { %2241 = vmatpush2.bf16.msra.mxu1 %v3666_v23  ;;  %2295 = vmatprep.subr.bf16.mxu0 %v3677_v28 }
 0x345   : > { %2242 = vmatprep.subr.bf16.mxu1 %v3674_v27 }
 0x347   : > { %2296 = vmatpush2.bf16.msra.mxu0 %v3675_v30 }
 0x348   : > { %2243 = vmatpush2.bf16.msra.mxu1 %v3672_v29  ;;  %v1693_v29 = vlaneseq }
 0x3ca   : > { %v5177_v31 = vpop.f32.mrf.mxu0 }
 0x3cb   : > { %v1636_v38 = vmul.f32 %v5177_v31, %v5177_v31 }
 0x3cc   : > { %v5179_v32 = vpop.f32.mrf.mxu0 }
 0x3cd   : > { %v1637_v41 = vmul.f32 %v5179_v32, %v5179_v32 }
 0x3ce   : > { %v5181_v33 = vpop.f32.mrf.mxu0 }
 0x3cf   : > { %v1638_v35 = vmul.f32 %v5181_v33, %v5181_v33  ;;  %v1618_v39 = vadd.f32 %v5181_v33, %v5177_v31 }
 0x3d0   : > { %v5183_v34 = vpop.f32.mrf.mxu0 }
 0x3d1   : > { %v1639_v36 = vmul.f32 %v5183_v34, %v5183_v34  ;;  %v1644_v43 = vadd.f32 %v1638_v35, %v1636_v38  ;;  %v1627_v44 = vadd.f32 %v5183_v34, %v5179_v32 }
 0x3d2   : > { %v5189_v37 = vpop.f32.mrf.mxu0 }
 0x3d3   : > { %v1640_v40 = vmul.f32 %v5189_v37, %v5189_v37  ;;  %v1619_v45 = vadd.f32 %v1618_v39, %v5189_v37  ;;  %v1653_v47 = vadd.f32 %v1639_v36, %v1637_v41  ;;  %v5217_v36 = vshrl.u32 %v1693_v29, 7  ;;  %v1616_v39 = vld [vmem:[%s5639_s8] sm:$0x3] }
 0x3d4   : > { %v5199_v42 = vpop.f32.mrf.mxu0  ;;  %v1617_v41 = vld [vmem:[%s5640_s9] sm:$0x3] }
 0x3d5   : > { %v1641_v46 = vmul.f32 %v5199_v42, %v5199_v42  ;;  %v1645_v49 = vadd.f32 %v1644_v43, %v1640_v40  ;;  %v1628_v50 = vadd.f32 %v1627_v44, %v5199_v42  ;;  %v5220_v38 = vsub.s32 0, %v5217_v36 }
 0x3d6   : > { %v5206_v48 = vpop.f32.mrf.mxu0  ;;  %v5226_v40 = vsub.s32 1, %v5217_v36 }
 0x3d7   : > { %v1620_v51 = vadd.f32 %v1619_v45, %v5206_v48  ;;  %v1642_v52 = vmul.f32 %v5206_v48, %v5206_v48  ;;  %v1654_v53 = vadd.f32 %v1653_v47, %v1641_v46  ;;  %v1696_v43 = vrot.slane %v1616_v39, %v5220_v38 }
 0x3d8   : > { %v5212_v54 = vpop.f32.mrf.mxu0 }
 0x3d9   : > { %v1621_v55 = vrot.slane %v1620_v51, 4  ;;  %v1646_v56 = vadd.f32 %v1645_v49, %v1642_v52  ;;  %v1629_v57 = vadd.f32 %v1628_v50, %v5212_v54  ;;  %v1643_v58 = vmul.f32 %v5212_v54, %v5212_v54 }
 0x3da   : > { %v1700_v50 = vrot.slane %v1616_v39, %v5226_v40  ;;  %v1850_v39 = vld [vmem:[%s1129_s23] sm:$0xf] }
 0x3db   : > { %v1622_v59 = vadd.f32 %v1621_v55, %v1620_v51  ;;  %v1647_v60 = vrot.slane %v1646_v56, 4  ;;  %v1630_v61 = vrot.slane %v1629_v57, 4  ;;  %v1655_v62 = vadd.f32 %v1654_v53, %v1643_v58 }
 0x3dc   : > { %v1715_v51 = vrot.slane %v1617_v41, %v5220_v38 }
 0x3dd   : > { %v1623_v63 = vrot.slane %v1622_v59, 2  ;;  %v1648_v0 = vadd.f32 %v1647_v60, %v1646_v56  ;;  %v1631_v1 = vadd.f32 %v1630_v61, %v1629_v57  ;;  %v1656_v2 = vrot.slane %v1655_v62, 4 }
 0x3df   : > { %v1624_v3 = vadd.f32 %v1623_v63, %v1622_v59  ;;  %v1649_v4 = vrot.slane %v1648_v0, 2  ;;  %v1632_v5 = vrot.slane %v1631_v1, 2  ;;  %v1657_v6 = vadd.f32 %v1656_v2, %v1655_v62 }
 0x3e1   : > { %v1625_v7 = vrot.slane %v1624_v3, 1  ;;  %v1650_v8 = vadd.f32 %v1649_v4, %v1648_v0  ;;  %v1633_v9 = vadd.f32 %v1632_v5, %v1631_v1  ;;  %v1658_v10 = vrot.slane %v1657_v6, 2 }
 0x3e3   : > { %v1626_v11 = vadd.f32 %v1625_v7, %v1624_v3  ;;  %v1651_v12 = vrot.slane %v1650_v8, 1  ;;  %v1634_v13 = vrot.slane %v1633_v9, 1  ;;  %v1659_v14 = vadd.f32 %v1658_v10, %v1657_v6 }
 0x3e5   : > { %v1652_v15 = vadd.f32 %v1651_v12, %v1650_v8  ;;  %v1662_v16 = vmul.f32 0.03125, %v1626_v11  ;;  %v1635_v17 = vadd.f32 %v1634_v13, %v1633_v9  ;;  %v1660_v18 = vrot.slane %v1659_v14, 1 }
 0x3e7   : > { %v1664_v19 = vmul.f32 0.03125, %v1652_v15  ;;  %v1666_v20 = vmul.f32 %v1662_v16, %v1662_v16  ;;  %v1661_v21 = vadd.f32 %v1660_v18, %v1659_v14  ;;  %v1663_v22 = vmul.f32 0.03125, %v1635_v17 }
 0x3e8   : > { %v1678_v44 = vsub.f32 %v5206_v48, %v1662_v16  ;;  %v1672_v45 = vsub.f32 %v5177_v31, %v1662_v16  ;;  %v1674_v46 = vsub.f32 %v5181_v33, %v1662_v16  ;;  %v1676_v47 = vsub.f32 %v5189_v37, %v1662_v16 }
 0x3e9   : > { %v1668_v23 = vsub.f32 %v1664_v19, %v1666_v20  ;;  %v1665_v24 = vmul.f32 0.03125, %v1661_v21  ;;  %v1667_v25 = vmul.f32 %v1663_v22, %v1663_v22  ;;  %v1679_v57 = vsub.f32 %v5212_v54, %v1663_v22 }
 0x3ea   : > { %v1673_v58 = vsub.f32 %v5179_v32, %v1663_v22  ;;  %v1675_v48 = vsub.f32 %v5183_v34, %v1663_v22  ;;  %v1677_v31 = vsub.f32 %v5199_v42, %v1663_v22  ;;  %v1719_v37 = vrot.slane %v1617_v41, %v5226_v40 }
 0x3eb   : > { %v1670_v26 = vmax.f32 %v1668_v23, 0.0  ;;  %v1669_v27 = vsub.f32 %v1665_v24, %v1667_v25  ;;  %v1866_v41 = vsub.s32 3, %v5217_v36 }
 0x3ed   : > { %v1680_v28 = vadd.f32 1e-05, %v1670_v26  ;;  %v1671_v30 = vmax.f32 %v1669_v27, 0.0 }
 0x3ef   : > { %3682 = vrsqrt.f32 %v1680_v28  ;;  %v1681_v35 = vadd.f32 1e-05, %v1671_v30 }
 0x3f1   : > { %3684 = vrsqrt.f32 %v1681_v35  ;;  %v1862_v35 = vsub.s32 2, %v5217_v36 }
 0x3fc   : > { %v3683_v49 = vpop.eup %3682 }
 0x3fd   : > { %v1690_v52 = vmul.f32 %v3683_v49, %v1678_v44  ;;  %v1684_v53 = vmul.f32 %v3683_v49, %v1672_v45  ;;  %v1686_v55 = vmul.f32 %v3683_v49, %v1674_v46  ;;  %v1688_v56 = vmul.f32 %v3683_v49, %v1676_v47 }
 0x3fe   : > { %v3685_v33 = vpop.eup %3684  ;;  %v1863_v44 = vrot.slane %v1850_v39, %v1862_v35  ;;  %v1859_v45 = vrot.slane %v1850_v39, %v5226_v40  ;;  %v1867_v46 = vrot.slane %v1850_v39, %v1866_v41 }
 0x3ff   : > { %v1703_v59 = vmul.f32 %v1696_v43, %v1684_v53  ;;  %v1705_v60 = vmul.f32 %v1696_v43, %v1686_v55  ;;  %v1691_v61 = vmul.f32 %v3685_v33, %v1679_v57  ;;  %v1685_v62 = vmul.f32 %v3685_v33, %v1673_v58 }
 0x400   : > { %v1687_v63 = vmul.f32 %v3685_v33, %v1675_v48  ;;  %v1689_v0 = vmul.f32 %v3685_v33, %v1677_v31  ;;  %v1709_v1 = vmul.f32 %v1696_v43, %v1690_v52  ;;  %v1707_v4 = vmul.f32 %v1696_v43, %v1688_v56 }
 0x401   : > { %v1722_v2 = vadd.f32 %v1715_v51, %v1703_v59  ;;  %v1724_v3 = vadd.f32 %v1715_v51, %v1705_v60  ;;  %v1710_v54 = vmul.f32 %v1700_v50, %v1691_v61  ;;  %v1704_v5 = vmul.f32 %v1700_v50, %v1685_v62 }
 0x402   : > { %v1706_v32 = vmul.f32 %v1700_v50, %v1687_v63  ;;  %v1708_v6 = vmul.f32 %v1700_v50, %v1689_v0  ;;  %v1726_v12 = vadd.f32 %v1715_v51, %v1707_v4  ;;  %v1728_v13 = vadd.f32 %v1715_v51, %v1709_v1 }
 0x403   : > { %vm1730_vm10 = vcmp.gt.f32.partialorder %v1722_v2, 0.0  ;;  %vm1732_vm11 = vcmp.gt.f32.partialorder %v1724_v3, 0.0  ;;  %v1738_v34 = vmul.f32 0.2, %v1722_v2  ;;  %v1740_v42 = vmul.f32 0.2, %v1724_v3 }
 0x404   : > { %v1723_v7 = vadd.f32 %v1719_v37, %v1704_v5  ;;  %v1725_v8 = vadd.f32 %v1719_v37, %v1706_v32  ;;  %v1727_v9 = vadd.f32 %v1719_v37, %v1708_v6  ;;  %v1729_v10 = vadd.f32 %v1719_v37, %v1710_v54 }
 0x405   : > { %v1746_v11 = vsel %vm1730_vm10, %v1722_v2, %v1738_v34  ;;  %v1748_v16 = vsel %vm1732_vm11, %v1724_v3, %v1740_v42  ;;  %v1742_v26 = vmul.f32 0.2, %v1726_v12  ;;  %v1744_v27 = vmul.f32 0.2, %v1728_v13 }
 0x406   : > { %vm1731_vm12 = vcmp.gt.f32.partialorder %v1723_v7, 0.0  ;;  %vm1733_vm13 = vcmp.gt.f32.partialorder %v1725_v8, 0.0  ;;  %v1739_v14 = vmul.f32 0.2, %v1723_v7  ;;  %v1741_v15 = vmul.f32 0.2, %v1725_v8 }
 0x407   : > { %vm1735_vm14 = vcmp.gt.f32.partialorder %v1727_v9, 0.0  ;;  %vm1737_vm15 = vcmp.gt.f32.partialorder %v1729_v10, 0.0  ;;  %v1743_v17 = vmul.f32 0.2, %v1727_v9  ;;  %v1745_v20 = vmul.f32 0.2, %v1729_v10 }
 0x408   : > { %v1747_v18 = vsel %vm1731_vm12, %v1723_v7, %v1739_v14  ;;  %v1749_v19 = vsel %vm1733_vm13, %v1725_v8, %v1741_v15  ;;  %v3217_v23 = vpack.c.bf16 %v1748_v16, %v1746_v11  ;;  %vm1734_vm0 = vcmp.gt.f32.partialorder %v1726_v12, 0.0 }
 0x409   : > { %v3218_v21 = vpack.c.bf16 %v1749_v19, %v1747_v18  ;;  %v1751_v22 = vsel %vm1735_vm14, %v1727_v9, %v1743_v17  ;;  %v1753_v24 = vsel %vm1737_vm15, %v1729_v10, %v1745_v20  ;;  %vm1736_vm1 = vcmp.gt.f32.partialorder %v1728_v13, 0.0 }
 0x40a   : > { %v3220_v25 = vpack.c.bf16 %v1753_v24, %v1751_v22  ;;  %v1750_v28 = vsel %vm1734_vm0, %v1726_v12, %v1742_v26  ;;  %v1752_v29 = vsel %vm1736_vm1, %v1728_v13, %v1744_v27  ;;  %v1855_v43 = vrot.slane %v1850_v39, %v5220_v38 }
 0x40b   : > { %2244 = vmatprep.mubr.bf16.mxu1 %v3218_v21  ;;  %2297 = vmatprep.mubr.bf16.mxu0 %v3218_v21  ;;  %v3219_v30 = vpack.c.bf16 %v1752_v29, %v1750_v28 }
 0x40c   : > { %2245 = vmatmul.mubr.bf16.vlgmr.msra.gmra.mxu1 %v3217_v23  ;;  %2298 = vmatmul.mubr.bf16.vlgmr.msra.gmra.mxu0 %v3217_v23 }
 0x40d   : > { %2254 = vmatprep.mubr.bf16.mxu1 %v3220_v25  ;;  %2307 = vmatprep.mubr.bf16.mxu0 %v3220_v25 }
 0x414   : > { %2255 = vmatmul.mubr.bf16.gmra.mxu1 %v3219_v30  ;;  %2308 = vmatmul.mubr.bf16.gmra.mxu0 %v3219_v30 }
 0x4cc   : > { %v2246_v47 = vpop.f32.mrf.mxu1  ;;  %v2299_v49 = vpop.f32.mrf.mxu0 }
 0x4cd   : > { %v2247_v50 = vadd.f32 %v2246_v47, %v1855_v43  ;;  %v2300_v51 = vadd.f32 %v2299_v49, %v1863_v44 }
 0x4ce   : > { %v2248_v52 = vpop.f32.mrf.mxu1  ;;  %v2301_v53 = vpop.f32.mrf.mxu0 }
 0x4cf   : > { %3686 = vtanh.f32 %v2247_v50  ;;  %v2249_v55 = vadd.f32 %v2248_v52, %v1859_v45  ;;  %v2302_v56 = vadd.f32 %v2301_v53, %v1867_v46 }
 0x4d0   : > { %3688 = vtanh.f32 %v2300_v51  ;;  %v2250_v57 = vpop.f32.mrf.mxu1  ;;  %v2303_v58 = vpop.f32.mrf.mxu0 }
 0x4d1   : > { %3690 = vtanh.f32 %v2249_v55  ;;  %v2251_v36 = vadd.f32 %v2250_v57, %v1855_v43  ;;  %v2304_v48 = vadd.f32 %v2303_v58, %v1863_v44 }
 0x4d2   : > { %3692 = vtanh.f32 %v2302_v56  ;;  %v2252_v38 = vpop.f32.mrf.mxu1  ;;  %v2305_v40 = vpop.f32.mrf.mxu0 }
 0x4d3   : > { %3694 = vtanh.f32 %v2251_v36  ;;  %v2253_v31 = vadd.f32 %v2252_v38, %v1859_v45  ;;  %v2306_v33 = vadd.f32 %v2305_v40, %v1867_v46 }
 0x4d4   : > { %3696 = vtanh.f32 %v2304_v48  ;;  %v2256_v37 = vpop.f32.mrf.mxu1  ;;  %v2309_v59 = vpop.f32.mrf.mxu0 }
 0x4d5   : > { %3698 = vtanh.f32 %v2253_v31  ;;  %v2257_v60 = vadd.f32 %v2256_v37, %v1855_v43  ;;  %v2310_v61 = vadd.f32 %v2309_v59, %v1863_v44 }
 0x4d6   : > { %3700 = vtanh.f32 %v2306_v33  ;;  %v2258_v62 = vpop.f32.mrf.mxu1  ;;  %v2311_v63 = vpop.f32.mrf.mxu0 }
 0x4d7   : > { %3702 = vtanh.f32 %v2257_v60  ;;  %v2259_v0 = vadd.f32 %v2258_v62, %v1859_v45  ;;  %v2312_v1 = vadd.f32 %v2311_v63, %v1867_v46 }
 0x4d8   : > { %3704 = vtanh.f32 %v2310_v61  ;;  %v2260_v2 = vpop.f32.mrf.mxu1  ;;  %v2313_v3 = vpop.f32.mrf.mxu0 }
 0x4d9   : > { %3706 = vtanh.f32 %v2259_v0  ;;  %v2261_v4 = vadd.f32 %v2260_v2, %v1855_v43  ;;  %v2314_v54 = vadd.f32 %v2313_v3, %v1863_v44 }
 0x4da   : > { %3708 = vtanh.f32 %v2312_v1  ;;  %v2262_v5 = vpop.f32.mrf.mxu1  ;;  %v2315_v32 = vpop.f32.mrf.mxu0 }
 0x4db   : > { %3710 = vtanh.f32 %v2261_v4  ;;  %v2263_v6 = vadd.f32 %v2262_v5, %v1859_v45  ;;  %v2316_v34 = vadd.f32 %v2315_v32, %v1867_v46 }
 0x4dc   : > { %v3687_v42 = vpop.eup %3686  ;;  %3712 = vtanh.f32 %v2314_v54 }
 0x4dd   : > { %v3689_v7 = vpop.eup %3688  ;;  %2334 = vst [vmem:[%s5257_s21] sm:$0xff] %v3687_v42  ;;  %3714 = vtanh.f32 %v2263_v6 }
 0x4de   : > { %v3691_v8 = vpop.eup %3690  ;;  %2336 = vst [vmem:[%s5257_s21 + $0x10] sm:$0xff] %v3689_v7  ;;  %3716 = vtanh.f32 %v2316_v34 }
 0x4df   : > { %v3693_v9 = vpop.eup %3692  ;;  %2335 = vst [vmem:[%s5257_s21 + $0x8] sm:$0xff] %v3691_v8 }
 0x4e0   : > { %v3695_v10 = vpop.eup %3694  ;;  %2337 = vst [vmem:[%s5257_s21 + $0x18] sm:$0xff] %v3693_v9 }
 0x4e1   : > { %v3697_v11 = vpop.eup %3696  ;;  %2338 = vst [vmem:[%s5257_s21 + $0x20] sm:$0xff] %v3695_v10 }
 0x4e2   : > { %v3699_v12 = vpop.eup %3698  ;;  %2340 = vst [vmem:[%s5257_s21 + $0x30] sm:$0xff] %v3697_v11 }
 0x4e3   : > { %v3701_v13 = vpop.eup %3700  ;;  %2339 = vst [vmem:[%s5257_s21 + $0x28] sm:$0xff] %v3699_v12 }
 0x4e4   : > { %v3703_v14 = vpop.eup %3702  ;;  %2341 = vst [vmem:[%s5257_s21 + $0x38] sm:$0xff] %v3701_v13 }
 0x4e5   : > { %v3705_v15 = vpop.eup %3704  ;;  %2342 = vst [vmem:[%s5257_s21 + $0x40] sm:$0xff] %v3703_v14 }
 0x4e6   : > { %v3707_v16 = vpop.eup %3706  ;;  %2344 = vst [vmem:[%s5257_s21 + $0x50] sm:$0xff] %v3705_v15 }
 0x4e7   : > { %v3709_v17 = vpop.eup %3708  ;;  %2343 = vst [vmem:[%s5257_s21 + $0x48] sm:$0xff] %v3707_v16 }
 0x4e8   : > { %v3711_v18 = vpop.eup %3710  ;;  %2345 = vst [vmem:[%s5257_s21 + $0x58] sm:$0xff] %v3709_v17  ;;  %2356 = sbr.rel (!%p4119_p6) target bundleno = 1387 (0x56b), region = 142 }
 0x4e9   : > { %v3713_v19 = vpop.eup %3712  ;;  %2346 = vst [vmem:[%s5257_s21 + $0x60] sm:$0xff] %v3711_v18 }
 0x4ea   : > { %v3715_v20 = vpop.eup %3714  ;;  %2348 = vst [vmem:[%s5257_s21 + $0x70] sm:$0xff] %v3713_v19 }
 0x4eb   : > { %v3717_v21 = vpop.eup %3716  ;;  %2347 = vst [vmem:[%s5257_s21 + $0x68] sm:$0xff] %v3715_v20 }
 0x4ec   : > { %2349 = vst [vmem:[%s5257_s21 + $0x78] sm:$0xff] %v3717_v21 }
 0x4ed   : > { %s5720_s24 = smov (!%p2360_p3, %s2359_s24), 4 }
 0x4ee   : > { %s3174_s13 = sshll.u32 %s5720_s24, 9  ;;  %s5284_s10 = sshll.u32 %s5720_s24, 3 }
 0x4ef   : > { %p3178_p4 = scmp.eq.s32.totalorder %s3174_s13, 0 }
 0x4f0   : > { %p2370_p5 = scmp.lt.u32.totalorder (!%p3178_p4), %s5284_s10, 8 }
 0x4f1   : > { %2369 = sbr.rel (%p3178_p4) target bundleno = 1387 (0x56b), region = 146 }
 0x4f6   : > { %2373 = sbr.rel (%p2370_p5) target bundleno = 1375 (0x55f), region = 150  ;;  %s5288_s11 = sand.u32 (!%p2370_p5), 7, %s5284_s10  }
 0x4f7   : > { %p2396_p6 = scmp.eq.s32.totalorder (!%p2370_p5), %s5288_s11, 0  ;;  %p3179_p7 = scmp.ne.s32.totalorder (!%p2370_p5), %s5288_s11, 0 }
 0x4fb   : > { %2399 = sbr.rel (%p3179_p7) target bundleno = 1321 (0x529), region = 165  ;;  %s2400_s19 = sshrl.u32 (!%p3179_p7), %s5284_s10, 3 }
 0x4fc   : > { %s5295_s20 = sshrl.u32 (!%p3179_p7), %s2400_s19, 4 }
 0x4fd   : > { %p3180_p8 = scmp.le.s32.totalorder (!%p3179_p7), %s5295_s20, 0 }
 0x500   : > { %2947 = sbr.rel (%p3180_p8) target bundleno = 1305 (0x519), region = 316  ;;  %s5686_s16 = smov (!%p3180_p8), %s5282_s30 }
 0x501   : > { %s5687_s12 = smov (!%p3180_p8), %s5257_s21  ;;  %s5304_s18 = smov (!%p3180_p8), 0  }
 0x502   : > { %s5306_s15 = smov (!%p3180_p8), 0  }
 0x505 LB: >> { %v2413_v22 = vld [vmem:[%s3956_s12] sm:$0xff]  ;;  %v2415_v23 = vld [vmem:[%s3956_s12 + $0x8] sm:$0xff]  ;;  %v2417_v24 = vld [vmem:[%s3956_s12 + $0x10] sm:$0xff]  ;;  %s2541_s23 = sadd.s32 1, %s3960_s18  ;;  %s2407_s15 = sadd.s32 1, %s3964_s15   ;;  %s3964_s15 = sphi %s5306_s15, %s2407_s15   ;;  %s3960_s18 = sphi %s5304_s18, %s5691_s18   ;;  %s3956_s12 = sphi %s5687_s12, %s5690_s12   ;;  %s3952_s16 = sphi %s5686_s16, %s5689_s16  }
 0x506   : >> { %2414 = vst [vmem:[%s3952_s16] sm:$0xff] %v2413_v22  ;;  %2416 = vst [vmem:[%s3952_s16 + $0x8] sm:$0xff] %v2415_v23  ;;  %v2419_v25 = vld [vmem:[%s3956_s12 + $0x18] sm:$0xff]  ;;  %v2421_v26 = vld [vmem:[%s3956_s12 + $0x20] sm:$0xff]  ;;  %p5347_p9 = scmp.ge.s32.totalorder %s2541_s23, %s5295_s20  ;;  %p2406_p10 = scmp.ge.s32.totalorder %s2407_s15, %s5295_s20 }
 0x507   : >> { %2418 = vst [vmem:[%s3952_s16 + $0x10] sm:$0xff] %v2417_v24  ;;  %v2423_v27 = vld [vmem:[%s3956_s12 + $0x28] sm:$0xff]  ;;  %2420 = vst [vmem:[%s3952_s16 + $0x18] sm:$0xff] %v2419_v25  ;;  %v2425_v28 = vld [vmem:[%s3956_s12 + $0x30] sm:$0xff] }
 0x508   : >> { %2422 = vst [vmem:[%s3952_s16 + $0x20] sm:$0xff] %v2421_v26  ;;  %2424 = vst [vmem:[%s3952_s16 + $0x28] sm:$0xff] %v2423_v27  ;;  %v2451_v29 = vld [vmem:[%s3956_s12 + $0x38] sm:$0xff]  ;;  %v2453_v30 = vld [vmem:[%s3956_s12 + $0x40] sm:$0xff]  ;;  %s5722_s23 = smov (%p5347_p9, %s2541_s23), 0 }
 0x509   : >> { %2446 = vst [vmem:[%s3952_s16 + $0x38] sm:$0xff] %v2421_v26  ;;  %2448 = vst [vmem:[%s3952_s16 + $0x40] sm:$0xff] %v2423_v27  ;;  %v2455_v35 = vld [vmem:[%s3956_s12 + $0x48] sm:$0xff]  ;;  %v2457_v39 = vld [vmem:[%s3956_s12 + $0x50] sm:$0xff]  ;;  %s3181_s22 = sshll.u32 %s5722_s23, 7  ;;  %s5691_s18 = smov %s5722_s23 }
 0x50a   : >> { %2426 = vst [vmem:[%s3952_s16 + $0x30] sm:$0xff] %v2425_v28  ;;  %2450 = vst [vmem:[%s3952_s16 + $0x48] sm:$0xff] %v2425_v28  ;;  %v2483_v41 = vld [vmem:[%s3956_s12 + $0x58] sm:$0xff]  ;;  %v2485_v43 = vld [vmem:[%s3956_s12 + $0x60] sm:$0xff]  ;;  %s2546_s29 = scalar_lea.vmem %s5257_s21, %s3181_s22 [#allocation4]   ;;  %s2547_s24 = scalar_lea.vmem %s5282_s30, %s3181_s22  }
 0x50b   : >> { %2452 = vst [vmem:[%s3952_s16 + $0x50] sm:$0xff] %v2451_v29  ;;  %2454 = vst [vmem:[%s3952_s16 + $0x58] sm:$0xff] %v2453_v30  ;;  %v2487_v44 = vld [vmem:[%s3956_s12 + $0x68] sm:$0xff]  ;;  %v2489_v45 = vld [vmem:[%s3956_s12 + $0x70] sm:$0xff] }
 0x50c   : >> { %2478 = vst [vmem:[%s3952_s16 + $0x70] sm:$0xff] %v2453_v30  ;;  %2456 = vst [vmem:[%s3952_s16 + $0x60] sm:$0xff] %v2455_v35  ;;  %v2515_v46 = vld [vmem:[%s3956_s12 + $0x78] sm:$0xff]  ;;  %v2517_v47 = vld [vmem:[%s3956_s12 + $0x80] sm:$0xff] }
 0x50d   : >> { %2458 = vst [vmem:[%s3952_s16 + $0x68] sm:$0xff] %v2457_v39  ;;  %2480 = vst [vmem:[%s3952_s16 + $0x78] sm:$0xff] %v2455_v35  ;;  %v2519_v49 = vld [vmem:[%s3956_s12 + $0x88] sm:$0xff]  ;;  %v2521_v50 = vld [vmem:[%s3956_s12 + $0x90] sm:$0xff] }
 0x50e   : >> { %2482 = vst [vmem:[%s3952_s16 + $0x80] sm:$0xff] %v2457_v39  ;;  %2484 = vst [vmem:[%s3952_s16 + $0x88] sm:$0xff] %v2483_v41  ;;  %v2523_v51 = vld [vmem:[%s3956_s12 + $0x98] sm:$0xff]  ;;  %v2525_v52 = vld [vmem:[%s3956_s12 + $0xa0] sm:$0xff] }
 0x50f   : >> { %2486 = vst [vmem:[%s3952_s16 + $0x90] sm:$0xff] %v2485_v43  ;;  %2488 = vst [vmem:[%s3952_s16 + $0x98] sm:$0xff] %v2487_v44  ;;  %v2527_v53 = vld [vmem:[%s3956_s12 + $0xa8] sm:$0xff]  ;;  %v2529_v55 = vld [vmem:[%s3956_s12 + $0xb0] sm:$0xff] }
 0x510   : >> { %2490 = vst [vmem:[%s3952_s16 + $0xa0] sm:$0xff] %v2489_v45  ;;  %2510 = vst [vmem:[%s3952_s16 + $0xa8] sm:$0xff] %v2485_v43  ;;  %v2531_v56 = vld [vmem:[%s3956_s12 + $0xb8] sm:$0xff]  ;;  %v2533_v57 = vld [vmem:[%s3956_s12 + $0xc0] sm:$0xff] }
 0x511   : >> { %2512 = vst [vmem:[%s3952_s16 + $0xb0] sm:$0xff] %v2487_v44  ;;  %2514 = vst [vmem:[%s3952_s16 + $0xb8] sm:$0xff] %v2489_v45  ;;  %v2535_v58 = vld [vmem:[%s3956_s12 + $0xc8] sm:$0xff]  ;;  %v2537_v36 = vld [vmem:[%s3956_s12 + $0xd0] sm:$0xff] }
 0x512   : >> { %2516 = vst [vmem:[%s3952_s16 + $0xc0] sm:$0xff] %v2515_v46  ;;  %2518 = vst [vmem:[%s3952_s16 + $0xc8] sm:$0xff] %v2517_v47  ;;  %v2539_v48 = vld [vmem:[%s3956_s12 + $0xd8] sm:$0xff]  ;;  %s5690_s12 = smov %s2546_s29 }
 0x513   : >> { %2520 = vst [vmem:[%s3952_s16 + $0xd0] sm:$0xff] %v2519_v49  ;;  %2522 = vst [vmem:[%s3952_s16 + $0xd8] sm:$0xff] %v2521_v50 }
 0x514   : >> { %2524 = vst [vmem:[%s3952_s16 + $0xe0] sm:$0xff] %v2523_v51  ;;  %2526 = vst [vmem:[%s3952_s16 + $0xe8] sm:$0xff] %v2525_v52  ;;  %2409 = sbr.rel (!%p2406_p10) target bundleno = 1285 (0x505), region = 322 }
 0x515   : >> { %2528 = vst [vmem:[%s3952_s16 + $0xf0] sm:$0xff] %v2527_v53  ;;  %2530 = vst [vmem:[%s3952_s16 + $0xf8] sm:$0xff] %v2529_v55 }
 0x516   : >> { %2532 = vst [vmem:[%s3952_s16 + $0x100] sm:$0xff] %v2531_v56  ;;  %2534 = vst [vmem:[%s3952_s16 + $0x108] sm:$0xff] %v2533_v57 }
 0x517   : >> { %2536 = vst [vmem:[%s3952_s16 + $0x110] sm:$0xff] %v2535_v58  ;;  %2538 = vst [vmem:[%s3952_s16 + $0x118] sm:$0xff] %v2537_v36 }
 0x518   : >> { %2540 = vst [vmem:[%s3952_s16 + $0x120] sm:$0xff] %v2539_v48  ;;  %s5689_s16 = smov %s2547_s24 }
 0x519 PF: > { %s5411_s28 = sand.u32 15, %s2400_s19   ;;  %s3213_s17 = sshll.u32 %s5295_s20, 11 }
 0x51a   : > { %s2552_s26 = sshra.s32 %s3213_s17, 4  ;;  %p3186_p11 = scmp.le.s32.totalorder %s5411_s28, 0 }
 0x51b   : > { %s5415_s27 = scalar_lea.vmem %s5257_s21, %s2552_s26 [#allocation4]   ;;  %s5418_s13 = scalar_lea.vmem %s5282_s30, %s2552_s26  }
 0x51c   : > { %2961 = sbr.rel (%p3186_p11) target bundleno = 1321 (0x529), region = 327  ;;  %s5692_s16 = smov (!%p3186_p11), %s5418_s13 }
 0x51d   : > { %s5693_s12 = smov (!%p3186_p11), %s5415_s27  ;;  %s5427_s18 = smov (!%p3186_p11), 0  }
 0x51e   : > { %s3978_s15 = smov (!%p3186_p11), 0  }
 0x521 LB: >> { %v2568_v38 = vld [vmem:[%s3972_s12] sm:$0xff]  ;;  %s2576_s19 = sadd.s32 1, %s3976_s18  ;;  %s2562_s15 = sadd.s32 1, %s3980_s15   ;;  %s3980_s15 = sphi %s3978_s15, %s2562_s15   ;;  %s3976_s18 = sphi %s5427_s18, %s5694_s18   ;;  %s3972_s12 = sphi %s5693_s12, %s2581_s12   ;;  %s3968_s16 = sphi %s5692_s16, %s2582_s16  }
 0x522   : >> { %v2570_v40 = vld [vmem:[%s3972_s12 + $0x20] sm:$0xff]  ;;  %2569 = vst [vmem:[%s3968_s16] sm:$0xff] %v2568_v38  ;;  %p2577_p12 = scmp.ge.s32.totalorder %s2576_s19, %s5411_s28  ;;  %p2561_p13 = scmp.ge.s32.totalorder %s2562_s15, %s5411_s28 }
 0x523   : >> { %v2572_v31 = vld [vmem:[%s3972_s12 + $0x40] sm:$0xff]  ;;  %2571 = vst [vmem:[%s3968_s16 + $0x38] sm:$0xff] %v2570_v40 }
 0x524   : >> { %2573 = vst [vmem:[%s3968_s16 + $0x70] sm:$0xff] %v2572_v31  ;;  %v2574_v33 = vld [vmem:[%s3972_s12 + $0x60] sm:$0xff]  ;;  %s5724_s19 = smov (%p2577_p12, %s2576_s19), 0  ;;  %2564 = sbr.rel (!%p2561_p13) target bundleno = 1313 (0x521), region = 333 }
 0x525   : >> { %2575 = vst [vmem:[%s3968_s16 + $0xa8] sm:$0xff] %v2574_v33  ;;  %s3187_s20 = sshll.u32 %s5724_s19, 3  ;;  %s5694_s18 = smov %s5724_s19 }
 0x526   : >> { %s2581_s12 = scalar_lea.vmem %s5415_s27, %s3187_s20 [#allocation4]   ;;  %s2582_s16 = scalar_lea.vmem %s5418_s13, %s3187_s20  }
 0x529 PF: > { %2585 = sbr.rel (%p2396_p6) target bundleno = 1375 (0x55f), region = 183  ;;  %s2587_s23 = ssub.s32 (!%p2396_p6), %s5284_s10, %s5288_s11 }
 0x52a   : > { %s2591_s14 = sshrl.u32 (!%p2396_p6), %s5284_s10, 3  ;;  %s5448_s22 = scalar_lea.vmem (!%p2396_p6), %s5257_s21, %s2587_s23 [#allocation4] }
 0x52b   : > { %s5451_s29 = scalar_lea.vmem (!%p2396_p6), %s5282_s30, %s2587_s23  ;;  %s5455_s24 = sshrl.u32 (!%p2396_p6), %s2591_s14, 4 }
 0x52c   : > { %p3189_p0 = scmp.le.s32.totalorder (!%p2396_p6), %s5455_s24, 0 }
 0x52e   : > { %2975 = sbr.rel (%p3189_p0) target bundleno = 1351 (0x547), region = 338  ;;  %s5695_s28 = smov (!%p3189_p0), %s5282_s30 }
 0x52f   : > { %s5696_s17 = smov (!%p3189_p0), %s5257_s21  ;;  %s5464_s26 = smov (!%p3189_p0), 0  }
 0x530   : > { %s5466_s27 = smov (!%p3189_p0), 0  }
 0x533 LB: >> { %v2604_v37 = vld [vmem:[%s3988_s17] sm:$0xff]  ;;  %v2606_v59 = vld [vmem:[%s3988_s17 + $0x8] sm:$0xff]  ;;  %v2608_v60 = vld [vmem:[%s3988_s17 + $0x10] sm:$0xff]  ;;  %s2732_s13 = sadd.s32 1, %s3992_s26  ;;  %s2598_s27 = sadd.s32 1, %s3996_s27   ;;  %s3996_s27 = sphi %s5466_s27, %s2598_s27   ;;  %s3992_s26 = sphi %s5464_s26, %s5700_s26   ;;  %s3988_s17 = sphi %s5696_s17, %s5699_s17   ;;  %s3984_s28 = sphi %s5695_s28, %s5698_s28  }
 0x534   : >> { %2605 = vst [vmem:[%s3984_s28] sm:$0xff] %v2604_v37  ;;  %2607 = vst [vmem:[%s3984_s28 + $0x8] sm:$0xff] %v2606_v59  ;;  %v2610_v61 = vld [vmem:[%s3988_s17 + $0x18] sm:$0xff]  ;;  %v2612_v62 = vld [vmem:[%s3988_s17 + $0x20] sm:$0xff]  ;;  %p5507_p1 = scmp.ge.s32.totalorder %s2732_s13, %s5455_s24  ;;  %p2597_p2 = scmp.ge.s32.totalorder %s2598_s27, %s5455_s24 }
 0x535   : >> { %2609 = vst [vmem:[%s3984_s28 + $0x10] sm:$0xff] %v2608_v60  ;;  %v2614_v63 = vld [vmem:[%s3988_s17 + $0x28] sm:$0xff]  ;;  %2611 = vst [vmem:[%s3984_s28 + $0x18] sm:$0xff] %v2610_v61  ;;  %v2616_v0 = vld [vmem:[%s3988_s17 + $0x30] sm:$0xff] }
 0x536   : >> { %2613 = vst [vmem:[%s3984_s28 + $0x20] sm:$0xff] %v2612_v62  ;;  %2615 = vst [vmem:[%s3984_s28 + $0x28] sm:$0xff] %v2614_v63  ;;  %v2642_v1 = vld [vmem:[%s3988_s17 + $0x38] sm:$0xff]  ;;  %v2644_v2 = vld [vmem:[%s3988_s17 + $0x40] sm:$0xff]  ;;  %s5726_s13 = smov (%p5507_p1, %s2732_s13), 0 }
 0x537   : >> { %2637 = vst [vmem:[%s3984_s28 + $0x38] sm:$0xff] %v2612_v62  ;;  %2639 = vst [vmem:[%s3984_s28 + $0x40] sm:$0xff] %v2614_v63  ;;  %v2646_v3 = vld [vmem:[%s3988_s17 + $0x48] sm:$0xff]  ;;  %v2648_v4 = vld [vmem:[%s3988_s17 + $0x50] sm:$0xff]  ;;  %s3190_s12 = sshll.u32 %s5726_s13, 7  ;;  %s5700_s26 = smov %s5726_s13 }
 0x538   : >> { %2617 = vst [vmem:[%s3984_s28 + $0x30] sm:$0xff] %v2616_v0  ;;  %2641 = vst [vmem:[%s3984_s28 + $0x48] sm:$0xff] %v2616_v0  ;;  %v2674_v54 = vld [vmem:[%s3988_s17 + $0x58] sm:$0xff]  ;;  %v2676_v5 = vld [vmem:[%s3988_s17 + $0x60] sm:$0xff]  ;;  %s2737_s18 = scalar_lea.vmem %s5257_s21, %s3190_s12 [#allocation4]   ;;  %s2738_s15 = scalar_lea.vmem %s5282_s30, %s3190_s12  }
 0x539   : >> { %2643 = vst [vmem:[%s3984_s28 + $0x50] sm:$0xff] %v2642_v1  ;;  %2645 = vst [vmem:[%s3984_s28 + $0x58] sm:$0xff] %v2644_v2  ;;  %v2678_v32 = vld [vmem:[%s3988_s17 + $0x68] sm:$0xff]  ;;  %v2680_v6 = vld [vmem:[%s3988_s17 + $0x70] sm:$0xff] }
 0x53a   : >> { %2669 = vst [vmem:[%s3984_s28 + $0x70] sm:$0xff] %v2644_v2  ;;  %2647 = vst [vmem:[%s3984_s28 + $0x60] sm:$0xff] %v2646_v3  ;;  %v2706_v34 = vld [vmem:[%s3988_s17 + $0x78] sm:$0xff]  ;;  %v2708_v42 = vld [vmem:[%s3988_s17 + $0x80] sm:$0xff] }
 0x53b   : >> { %2649 = vst [vmem:[%s3984_s28 + $0x68] sm:$0xff] %v2648_v4  ;;  %2671 = vst [vmem:[%s3984_s28 + $0x78] sm:$0xff] %v2646_v3  ;;  %v2710_v7 = vld [vmem:[%s3988_s17 + $0x88] sm:$0xff]  ;;  %v2712_v8 = vld [vmem:[%s3988_s17 + $0x90] sm:$0xff] }
 0x53c   : >> { %2673 = vst [vmem:[%s3984_s28 + $0x80] sm:$0xff] %v2648_v4  ;;  %2675 = vst [vmem:[%s3984_s28 + $0x88] sm:$0xff] %v2674_v54  ;;  %v2714_v9 = vld [vmem:[%s3988_s17 + $0x98] sm:$0xff]  ;;  %v2716_v10 = vld [vmem:[%s3988_s17 + $0xa0] sm:$0xff] }
 0x53d   : >> { %2677 = vst [vmem:[%s3984_s28 + $0x90] sm:$0xff] %v2676_v5  ;;  %2679 = vst [vmem:[%s3984_s28 + $0x98] sm:$0xff] %v2678_v32  ;;  %v2718_v11 = vld [vmem:[%s3988_s17 + $0xa8] sm:$0xff]  ;;  %v2720_v12 = vld [vmem:[%s3988_s17 + $0xb0] sm:$0xff] }
 0x53e   : >> { %2681 = vst [vmem:[%s3984_s28 + $0xa0] sm:$0xff] %v2680_v6  ;;  %2701 = vst [vmem:[%s3984_s28 + $0xa8] sm:$0xff] %v2676_v5  ;;  %v2722_v13 = vld [vmem:[%s3988_s17 + $0xb8] sm:$0xff]  ;;  %v2724_v14 = vld [vmem:[%s3988_s17 + $0xc0] sm:$0xff] }
 0x53f   : >> { %2703 = vst [vmem:[%s3984_s28 + $0xb0] sm:$0xff] %v2678_v32  ;;  %2705 = vst [vmem:[%s3984_s28 + $0xb8] sm:$0xff] %v2680_v6  ;;  %v2726_v15 = vld [vmem:[%s3988_s17 + $0xc8] sm:$0xff]  ;;  %v2728_v16 = vld [vmem:[%s3988_s17 + $0xd0] sm:$0xff] }
 0x540   : >> { %2707 = vst [vmem:[%s3984_s28 + $0xc0] sm:$0xff] %v2706_v34  ;;  %2709 = vst [vmem:[%s3984_s28 + $0xc8] sm:$0xff] %v2708_v42  ;;  %v2730_v17 = vld [vmem:[%s3988_s17 + $0xd8] sm:$0xff]  ;;  %s5699_s17 = smov %s2737_s18 }
 0x541   : >> { %2711 = vst [vmem:[%s3984_s28 + $0xd0] sm:$0xff] %v2710_v7  ;;  %2713 = vst [vmem:[%s3984_s28 + $0xd8] sm:$0xff] %v2712_v8 }
 0x542   : >> { %2715 = vst [vmem:[%s3984_s28 + $0xe0] sm:$0xff] %v2714_v9  ;;  %2717 = vst [vmem:[%s3984_s28 + $0xe8] sm:$0xff] %v2716_v10  ;;  %2600 = sbr.rel (!%p2597_p2) target bundleno = 1331 (0x533), region = 344 }
 0x543   : >> { %2719 = vst [vmem:[%s3984_s28 + $0xf0] sm:$0xff] %v2718_v11  ;;  %2721 = vst [vmem:[%s3984_s28 + $0xf8] sm:$0xff] %v2720_v12 }
 0x544   : >> { %2723 = vst [vmem:[%s3984_s28 + $0x100] sm:$0xff] %v2722_v13  ;;  %2725 = vst [vmem:[%s3984_s28 + $0x108] sm:$0xff] %v2724_v14 }
 0x545   : >> { %2727 = vst [vmem:[%s3984_s28 + $0x110] sm:$0xff] %v2726_v15  ;;  %2729 = vst [vmem:[%s3984_s28 + $0x118] sm:$0xff] %v2728_v16 }
 0x546   : >> { %2731 = vst [vmem:[%s3984_s28 + $0x120] sm:$0xff] %v2730_v17  ;;  %s5698_s28 = smov %s2738_s15 }
 0x547 PF: > { %s5571_s19 = sand.u32 15, %s2591_s14   ;;  %s3215_s20 = sshll.u32 %s5455_s24, 11 }
 0x548   : > { %s2743_s23 = sshra.s32 %s3215_s20, 4  ;;  %p3195_p3 = scmp.le.s32.totalorder %s5571_s19, 0 }
 0x549   : > { %s5575_s16 = scalar_lea.vmem %s5257_s21, %s2743_s23 [#allocation4]   ;;  %s5578_s12 = scalar_lea.vmem %s5282_s30, %s2743_s23  }
 0x54a   : > { %2989 = sbr.rel (%p3195_p3) target bundleno = 1367 (0x557), region = 349  ;;  %s5701_s28 = smov (!%p3195_p3), %s5578_s12 }
 0x54b   : > { %s5702_s17 = smov (!%p3195_p3), %s5575_s16  ;;  %s4006_s26 = smov (!%p3195_p3), 0  }
 0x54c   : > { %s4010_s27 = smov (!%p3195_p3), 0  }
 0x54f LB: >> { %v2759_v18 = vld [vmem:[%s4004_s17] sm:$0xff]  ;;  %s2767_s14 = sadd.s32 1, %s4008_s26  ;;  %s2753_s27 = sadd.s32 1, %s4012_s27   ;;  %s4012_s27 = sphi %s4010_s27, %s2753_s27   ;;  %s4008_s26 = sphi %s4006_s26, %s4007_s26   ;;  %s4004_s17 = sphi %s5702_s17, %s2772_s17   ;;  %s4000_s28 = sphi %s5701_s28, %s2773_s28  }
 0x550   : >> { %v2761_v19 = vld [vmem:[%s4004_s17 + $0x20] sm:$0xff]  ;;  %2760 = vst [vmem:[%s4000_s28] sm:$0xff] %v2759_v18  ;;  %p2768_p4 = scmp.ge.s32.totalorder %s2767_s14, %s5571_s19  ;;  %p2752_p5 = scmp.ge.s32.totalorder %s2753_s27, %s5571_s19 }
 0x551   : >> { %v2763_v20 = vld [vmem:[%s4004_s17 + $0x40] sm:$0xff]  ;;  %2762 = vst [vmem:[%s4000_s28 + $0x38] sm:$0xff] %v2761_v19 }
 0x552   : >> { %2764 = vst [vmem:[%s4000_s28 + $0x70] sm:$0xff] %v2763_v20  ;;  %v2765_v21 = vld [vmem:[%s4004_s17 + $0x60] sm:$0xff]  ;;  %s5728_s14 = smov (%p2768_p4, %s2767_s14), 0  ;;  %2755 = sbr.rel (!%p2752_p5) target bundleno = 1359 (0x54f), region = 355 }
 0x553   : >> { %2766 = vst [vmem:[%s4000_s28 + $0xa8] sm:$0xff] %v2765_v21  ;;  %s3196_s24 = sshll.u32 %s5728_s14, 3  ;;  %s4007_s26 = smov %s5728_s14  }
 0x554   : >> { %s2772_s17 = scalar_lea.vmem %s5575_s16, %s3196_s24 [#allocation4]   ;;  %s2773_s28 = scalar_lea.vmem %s5578_s12, %s3196_s24  }
 0x557 PF: > { %s4017_s13 = smov 1  }
 0x558   : > { %s2774_s18 = sshll.u32 %s4017_s13, %s5288_s11 }
 0x559   : > { %s3198_s15 = sadd.s32 4294967295, %s2774_s18 }
 0x55a   : > { %v2784_v22 = vld [vmem:[%s5448_s22] sm:%s3198_s15] }
 0x55b   : > { %v2786_v23 = vld [vmem:[%s5448_s22 + $0x20] sm:%s3198_s15]  ;;  %2785 = vst [vmem:[%s5451_s29] sm:%s3198_s15] %v2784_v22 }
 0x55c   : > { %2787 = vst [vmem:[%s5451_s29 + $0x38] sm:%s3198_s15] %v2786_v23  ;;  %v2788_v24 = vld [vmem:[%s5448_s22 + $0x40] sm:%s3198_s15] }
 0x55d   : > { %v2790_v25 = vld [vmem:[%s5448_s22 + $0x60] sm:%s3198_s15]  ;;  %2789 = vst [vmem:[%s5451_s29 + $0x70] sm:%s3198_s15] %v2788_v24 }
 0x55e   : > { %2791 = vst [vmem:[%s5451_s29 + $0xa8] sm:%s3198_s15] %v2790_v25 }
 0x55f PF: > { %p3199_p6 = scmp.ge.u32.totalorder %s5284_s10, 8 }
 0x560   : > { %s4018_s19 = smov (!%p3199_p6), 1  }
 0x561   : > { %2376 = sbr.rel (%p3199_p6) target bundleno = 1387 (0x56b), region = 154  ;;  %s2377_s11 = sshll.u32 (!%p3199_p6), %s4018_s19, %s5284_s10 }
 0x562   : > { %s3200_s20 = sadd.s32 (!%p3199_p6), 4294967295, %s2377_s11 }
 0x566   : > { %v2387_v26 = vld [vmem:[%s5257_s21] sm:%s3200_s20] }
 0x567   : > { %v2389_v27 = vld [vmem:[%s5257_s21 + $0x20] sm:%s3200_s20]  ;;  %2388 = vst [vmem:[%s5282_s30] sm:%s3200_s20] %v2387_v26 }
 0x568   : > { %2390 = vst [vmem:[%s5282_s30 + $0x38] sm:%s3200_s20] %v2389_v27  ;;  %v2391_v28 = vld [vmem:[%s5257_s21 + $0x40] sm:%s3200_s20] }
 0x569   : > { %v2393_v29 = vld [vmem:[%s5257_s21 + $0x60] sm:%s3200_s20]  ;;  %2392 = vst [vmem:[%s5282_s30 + $0x70] sm:%s3200_s20] %v2391_v28 }
 0x56a   : > { %2394 = vst [vmem:[%s5282_s30 + $0xa8] sm:%s3200_s20] %v2393_v29 }
 0x56b PF: > { %s22_s25 = sadd.s32 1, %s3884_s25   ;;  %s5703_s21 = sld [smem:[#allocation5_spill]] }
 0x56c   : > { %p19_p7 = scmp.ge.s32.totalorder %s22_s25, 4   ;;  %s5704_s22 = sld [smem:[#allocation10_spill]] }
 0x56d   : > { %s5705_s23 = sld [smem:[#allocation7_spill]] }
 0x56e   : > { %s5706_s24 = sld [smem:[#allocation8_spill]]  ;;  %21 = sbr.rel (!%p19_p7) target bundleno = 7 (0x7), region = 366 }

</bundles_post_ra>
